<compile_context>
chip_gen: v6e
topology: v6e:2x2x1
jax: 0.10.0
libtpu: 0.0.40
codegen_flags: <defaults>
</compile_context>

<pallas_src>
import math
from functools import partial

import jax
import jax.numpy as jnp
from jax.experimental import pallas as pl
from jax.experimental.pallas import tpu as pltpu


# --------------------------------------------------------------------------- #
# Kernels
# --------------------------------------------------------------------------- #
def _flash_attn_kernel(q_ref, k_ref, v_ref, o_ref, m_sc, l_sc, acc_sc, *,
                       scale, compute_dtype):
    """Online-softmax attention. Grid = (B, H//TH, S//TS); S axis is a reduction.

    q_ref: (1, TH, L, E)   k_ref: (1, TH, E, TS)   v_ref: (1, TH, TS, D)
    o_ref: (1, L, TH*D)    scratch: m/l (TH, L, 1) f32, acc (TH, L, D) f32
    """
    s_idx = pl.program_id(2)

    @pl.when(s_idx == 0)
    def _():
        m_sc[...] = jnp.full(m_sc.shape, -jnp.inf, dtype=m_sc.dtype)
        l_sc[...] = jnp.zeros(l_sc.shape, dtype=l_sc.dtype)
        acc_sc[...] = jnp.zeros(acc_sc.shape, dtype=acc_sc.dtype)

    # Fold the softmax scale into Q (TH*L*E mults << TH*L*S); cast operands to
    # the MXU compute dtype (bf16 knob for f32 inputs), accumulate in f32.
    q = (q_ref[0] * scale).astype(compute_dtype)            # (TH, L, E)
    k = k_ref[0].astype(compute_dtype)                       # (TH, E, TS) S on lanes
    v = v_ref[0].astype(compute_dtype)                       # (TH, TS, D)

    s = jnp.einsum('hle,hes->hls', q, k,
                   preferred_element_type=jnp.float32)       # (TH, L, TS) f32

    m_prev = m_sc[...]
    m_new = jnp.maximum(m_prev, jnp.max(s, axis=-1, keepdims=True))
    alpha = jnp.exp(m_prev - m_new)                          # (TH, L, 1)
    p = jnp.exp(s - m_new)                                   # (TH, L, TS) f32
    l_sc[...] = alpha * l_sc[...] + jnp.sum(p, axis=-1, keepdims=True)
    acc_sc[...] = alpha * acc_sc[...] + jnp.einsum(
        'hls,hsd->hld', p.astype(compute_dtype), v,
        preferred_element_type=jnp.float32)                  # (TH, L, D) f32
    m_sc[...] = m_new

    @pl.when(s_idx == pl.num_programs(2) - 1)
    def _():
        inv = pl.reciprocal(l_sc[...], approx=True)          # EUP slot, ~free
        out = acc_sc[...] * inv                              # (TH, L, D) f32
        th = out.shape[0]
        # Pack heads along lanes in one shot -> single unmasked (L, TH*D) store.
        packed = jnp.concatenate([out[h] for h in range(th)], axis=-1)
        o_ref[0] = packed.astype(o_ref.dtype)


def _attn_full_kernel(q_ref, k_ref, v_ref, o_ref, attn_ref, *,
                      scale, compute_dtype):
    """Full-S softmax variant used when the attention map must be returned.

    q_ref: (1, TH, L, E)  k_ref: (1, TH, E, S)  v_ref: (1, TH, S, D)
    o_ref: (1, L, TH*D)   attn_ref: (1, TH, L, S)
    """
    q = (q_ref[0] * scale).astype(compute_dtype)             # (TH, L, E)
    k = k_ref[0].astype(compute_dtype)                        # (TH, E, S)
    v = v_ref[0].astype(compute_dtype)                        # (TH, S, D)

    s = jnp.einsum('hle,hes->hls', q, k,
                   preferred_element_type=jnp.float32)        # (TH, L, S) f32
    m = jnp.max(s, axis=-1, keepdims=True)
    p = jnp.exp(s - m)
    denom = jnp.sum(p, axis=-1, keepdims=True)
    attn = p / denom                                          # exact normalization
    out = jnp.einsum('hls,hsd->hld', attn.astype(compute_dtype), v,
                     preferred_element_type=jnp.float32)      # (TH, L, D) f32

    th = out.shape[0]
    packed = jnp.concatenate([out[h] for h in range(th)], axis=-1)
    o_ref[0] = packed.astype(o_ref.dtype)
    attn_ref[0] = attn.astype(attn_ref.dtype)


# --------------------------------------------------------------------------- #
# Tiling / VMEM heuristics
# --------------------------------------------------------------------------- #
def _pick_head_tile(H, D):
    """Smallest head tile TH with TH | H and TH*D a multiple of 128 (lane-dense)."""
    for th in range(1, H + 1):
        if H % th == 0 and (th * D) % 128 == 0:
            return th
    return H  # full-dim block is always legal


def _pick_kv_tile(S):
    """KV tile TS with TS | S and TS % 128 == 0 (or TS == S)."""
    if S <= 512:
        return S
    for ts in (512, 384, 256, 128):
        if S % ts == 0:
            return ts
    return S  # irregular S: fall back to full-dim block


def _vmem_limit_bytes(itemsize, th, L, E, D, ts, S, output_attention):
    in_elems = th * L * E + th * E * ts + th * ts * D          # Q + K + V blocks
    out_elems = L * th * D + (th * L * S if output_attention else 0)
    scratch_f32 = th * L * (D + 2)                              # m, l, acc
    interm_f32 = 3 * th * L * ts                                # scores, p, scaled copies
    need = (2 * in_elems + 2 * out_elems) * itemsize + (scratch_f32 + interm_f32) * 4
    # 2x headroom for compiler-inserted relayouts; clamp to sane scoped-VMEM bounds.
    return int(min(128 * 1024 * 1024, max(32 * 1024 * 1024, 2 * need)))


# --------------------------------------------------------------------------- #
# Wrapper
# --------------------------------------------------------------------------- #
def autocorrelation_forward(queries, keys, values, attn_mask=None, factor=1,
                            output_attention=False, compute_dtype=None,
                            head_tile=None, kv_tile=None):
    """Pallas implementation of AutoCorrelation.forward (eval mode).

    queries: (B, L, H, E), keys: (B, S, H, E), values: (B, S, H, D)
    Returns (out, attn) with out: (B, L, H, D); attn is (B, H, L, S) when
    output_attention=True, else None. attn_mask is accepted but unused, exactly
    like the reference module. compute_dtype (e.g. jnp.bfloat16) selects the
    MXU operand dtype (accumulation is always f32).
    """
    del attn_mask, factor  # unused by the reference forward pass
    B, L, H, E = queries.shape
    _, S, _, D = values.shape
    scale = 1.0 / math.sqrt(E)
    cdt = jnp.dtype(compute_dtype) if compute_dtype is not None else jnp.dtype(queries.dtype)
    itemsize = jnp.dtype(queries.dtype).itemsize

    # Head-major layouts; K additionally gets S on the lane axis so the QK
    # matmul RHS needs no per-tile transpose. These transposes are materialized
    # once by XLA (dense copies) so kernel input DMAs stay rectangular slabs.
    q = jnp.transpose(queries, (0, 2, 1, 3))   # (B, H, L, E)
    k = jnp.transpose(keys,    (0, 2, 3, 1))   # (B, H, E, S)
    v = jnp.transpose(values,  (0, 2, 1, 3))   # (B, H, S, D)

    th = head_tile if head_tile is not None else _pick_head_tile(H, D)
    assert H % th == 0 and (th == H or (th * D) % 128 == 0), "bad head_tile"
    if output_attention:
        ts = S  # full-S softmax; the map has to be materialized anyway
    else:
        ts = kv_tile if kv_tile is not None else _pick_kv_tile(S)
        assert S % ts == 0 and (ts == S or ts % 128 == 0), "bad kv_tile"

    vmem_limit = _vmem_limit_bytes(itemsize, th, L, E, D, ts, S, output_attention)
    attn_bytes = (B * H * L * S * itemsize) if output_attention else 0
    cost = pl.CostEstimate(
        flops=2 * B * H * L * S * (E + D),
        transcendentals=B * H * L * S,
        bytes_accessed=itemsize * (queries.size + keys.size + values.size
                                   + B * L * H * D) + attn_bytes,
    )

    if not output_attention:
        out_flat = pl.pallas_call(
            partial(_flash_attn_kernel, scale=scale, compute_dtype=cdt),
            out_shape=jax.ShapeDtypeStruct((B, L, H * D), queries.dtype),
            grid_spec=pltpu.PrefetchScalarGridSpec(
                num_scalar_prefetch=0,
                grid=(B, H // th, S // ts),
                in_specs=[
                    pl.BlockSpec((1, th, L, E), lambda b, h, s: (b, h, 0, 0)),
                    pl.BlockSpec((1, th, E, ts), lambda b, h, s: (b, h, 0, s)),
                    pl.BlockSpec((1, th, ts, D), lambda b, h, s: (b, h, s, 0)),
                ],
                out_specs=pl.BlockSpec((1, L, th * D), lambda b, h, s: (b, 0, h)),
                scratch_shapes=[
                    pltpu.VMEM((th, L, 1), jnp.float32),   # running max m
                    pltpu.VMEM((th, L, 1), jnp.float32),   # running denom l
                    pltpu.VMEM((th, L, D), jnp.float32),   # running accumulator
                ],
            ),
            compiler_params=pltpu.CompilerParams(
                dimension_semantics=("parallel", "parallel", "arbitrary"),
                vmem_limit_bytes=vmem_limit,
            ),
            cost_estimate=cost,
        )(q, k, v)
        return out_flat.reshape(B, L, H, D), None

    out_flat, attn = pl.pallas_call(
        partial(_attn_full_kernel, scale=scale, compute_dtype=cdt),
        out_shape=(jax.ShapeDtypeStruct((B, L, H * D), queries.dtype),
                   jax.ShapeDtypeStruct((B, H, L, S), queries.dtype)),
        grid_spec=pltpu.PrefetchScalarGridSpec(
            num_scalar_prefetch=0,
            grid=(B, H // th),
            in_specs=[
                pl.BlockSpec((1, th, L, E), lambda b, h: (b, h, 0, 0)),
                pl.BlockSpec((1, th, E, S), lambda b, h: (b, h, 0, 0)),
                pl.BlockSpec((1, th, S, D), lambda b, h: (b, h, 0, 0)),
            ],
            out_specs=(pl.BlockSpec((1, L, th * D), lambda b, h: (b, 0, h)),
                       pl.BlockSpec((1, th, L, S), lambda b, h: (b, h, 0, 0))),
        ),
        compiler_params=pltpu.CompilerParams(
            dimension_semantics=("parallel", "parallel"),
            vmem_limit_bytes=vmem_limit,
        ),
        cost_estimate=cost,
    )(q, k, v)
    return out_flat.reshape(B, L, H, D), attn


# --------------------------------------------------------------------------- #
# Reference + test
# --------------------------------------------------------------------------- #
def _reference(queries, keys, values):
    E = queries.shape[-1]
    scale = 1.0 / math.sqrt(E)
    scores = jnp.einsum('blhe,bshe->bhls', queries, keys)
    attn = jax.nn.softmax(scale * scores, axis=-1)
    out = jnp.einsum('bhls,bshd->blhd', attn, values)
    return out, attn


if __name__ == "__main__":
    key = jax.random.PRNGKey(0)
    # H*D = 128 -> lane-dense output slab; S = 256 lets kv_tile=128 exercise the
    # multi-step online-softmax reduction.
    B, L, S, H, E, D = 2, 8, 256, 4, 32, 32
    kq, kk, kv = jax.random.split(key, 3)
    queries = jax.random.normal(kq, (B, L, H, E), dtype=jnp.float32)
    keys_ = jax.random.normal(kk, (B, S, H, E), dtype=jnp.float32)
    values = jax.random.normal(kv, (B, S, H, D), dtype=jnp.float32)

    ref_out, ref_attn = _reference(queries, keys_, values)

    # Default path, forced multi-step KV tiling (2 online-softmax steps).
    out, attn = autocorrelation_forward(queries, keys_, values, attn_mask=None,
                                        kv_tile=128)
    out = jax.block_until_ready(out)
    assert out.shape == (B, L, H, D)
    assert attn is None
    assert jnp.allclose(out, ref_out, atol=2e-3, rtol=2e-3)

    # Auto-tiled (single KV step) path.
    out1, _ = autocorrelation_forward(queries, keys_, values, attn_mask=None)
    out1 = jax.block_until_ready(out1)
    assert jnp.allclose(out1, ref_out, atol=2e-3, rtol=2e-3)

    # bf16 MXU compute path (f32 accumulation) -- looser tolerance.
    outb, _ = autocorrelation_forward(queries, keys_, values, attn_mask=None,
                                      compute_dtype=jnp.bfloat16, kv_tile=128)
    outb = jax.block_until_ready(outb)
    assert jnp.allclose(outb, ref_out, atol=3e-2, rtol=3e-2)

    # output_attention=True path (full-S softmax, exact normalization for map).
    out2, attn2 = autocorrelation_forward(queries, keys_, values, attn_mask=None,
                                          output_attention=True)
    out2, attn2 = jax.block_until_ready((out2, attn2))
    assert attn2.shape == (B, H, L, S)
    assert jnp.allclose(out2, ref_out, atol=2e-3, rtol=2e-3)
    assert jnp.allclose(attn2, ref_attn, atol=2e-3, rtol=2e-3)

    print("KERNEL_OK")
</pallas_src>

<mosaic_0001>
module attributes {stable_mosaic.version = 11 : i64} {
  func.func @_flash_attn_kernel(%arg0: i32, %arg1: i32, %arg2: i32, %arg3: memref<1x4x8x32xf32, #tpu.memory_space<vmem>>, %arg4: memref<1x4x32x128xf32, #tpu.memory_space<vmem>>, %arg5: memref<1x4x128x32xf32, #tpu.memory_space<vmem>>, %arg6: memref<1x8x128xf32, #tpu.memory_space<vmem>>, %arg7: memref<4x8x1xf32, #tpu.memory_space<vmem>>, %arg8: memref<4x8x1xf32, #tpu.memory_space<vmem>>, %arg9: memref<4x8x32xf32, #tpu.memory_space<vmem>>) attributes {dimension_semantics = [#tpu.dimension_semantics<parallel>, #tpu.dimension_semantics<parallel>, #tpu.dimension_semantics<arbitrary>], iteration_bounds = array<i64: 2, 1, 2>, scalar_prefetch = 0 : i64, scratch_operands = 3 : i64, tpu.core_type = #tpu.core_type<tc>, window_params = [{transform_indices = @transform_0, window_bounds = array<i64: 1, 4, 8, 32>}, {transform_indices = @transform_1, window_bounds = array<i64: 1, 4, 32, 128>}, {transform_indices = @transform_2, window_bounds = array<i64: 1, 4, 128, 32>}, {transform_indices = @transform_3, window_bounds = array<i64: 1, 8, 128>}]} {
    %c0_i32 = arith.constant 0 : i32
    %0 = arith.cmpi eq, %arg2, %c0_i32 : i32
    %1 = arith.extui %0 : i1 to i32
    %c0_i32_0 = arith.constant 0 : i32
    %2 = arith.cmpi ne, %1, %c0_i32_0 : i32
    scf.if %2 {
      %cst_35 = arith.constant 0xFF800000 : f32
      %37 = vector.broadcast %cst_35 : f32 to vector<4x8x1xf32>
      %c0_36 = arith.constant 0 : index
      %c0_37 = arith.constant 0 : index
      %c0_38 = arith.constant 0 : index
      %38 = vector.load %arg7[%c0_36, %c0_37, %c0_38] : memref<4x8x1xf32, #tpu.memory_space<vmem>>, vector<4x8x1xf32>
      tpu.vector_store %arg7[%c0_36, %c0_37, %c0_38], %37 {strides = array<i32>} : memref<4x8x1xf32, #tpu.memory_space<vmem>>, vector<4x8x1xf32>,
      %cst_39 = arith.constant 0.000000e+00 : f32
      %39 = vector.broadcast %cst_39 : f32 to vector<4x8x1xf32>
      %c0_40 = arith.constant 0 : index
      %c0_41 = arith.constant 0 : index
      %c0_42 = arith.constant 0 : index
      %40 = vector.load %arg8[%c0_40, %c0_41, %c0_42] : memref<4x8x1xf32, #tpu.memory_space<vmem>>, vector<4x8x1xf32>
      tpu.vector_store %arg8[%c0_40, %c0_41, %c0_42], %39 {strides = array<i32>} : memref<4x8x1xf32, #tpu.memory_space<vmem>>, vector<4x8x1xf32>,
      %cst_43 = arith.constant 0.000000e+00 : f32
      %41 = vector.broadcast %cst_43 : f32 to vector<4x8x32xf32>
      %c0_44 = arith.constant 0 : index
      %c0_45 = arith.constant 0 : index
      %c0_46 = arith.constant 0 : index
      %42 = vector.load %arg9[%c0_44, %c0_45, %c0_46] : memref<4x8x32xf32, #tpu.memory_space<vmem>>, vector<4x8x32xf32>
      tpu.vector_store %arg9[%c0_44, %c0_45, %c0_46], %41 {strides = array<i32>} : memref<4x8x32xf32, #tpu.memory_space<vmem>>, vector<4x8x32xf32>,
    } else {
    }
    %c0 = arith.constant 0 : index
    %c0_1 = arith.constant 0 : index
    %c0_2 = arith.constant 0 : index
    %c0_3 = arith.constant 0 : index
    %3 = vector.load %arg3[%c0, %c0_1, %c0_2, %c0_3] : memref<1x4x8x32xf32, #tpu.memory_space<vmem>>, vector<1x4x8x32xf32>
    %4 = vector.shape_cast %3 : vector<1x4x8x32xf32> to vector<4x8x32xf32>
    %cst = arith.constant 0.176776692 : f32
    %5 = vector.broadcast %cst : f32 to vector<4x8x32xf32>
    %6 = arith.mulf %4, %5 : vector<4x8x32xf32>
    %c0_4 = arith.constant 0 : index
    %c0_5 = arith.constant 0 : index
    %c0_6 = arith.constant 0 : index
    %c0_7 = arith.constant 0 : index
    %7 = vector.load %arg4[%c0_4, %c0_5, %c0_6, %c0_7] : memref<1x4x32x128xf32, #tpu.memory_space<vmem>>, vector<1x4x32x128xf32>
    %8 = vector.shape_cast %7 : vector<1x4x32x128xf32> to vector<4x32x128xf32>
    %c0_8 = arith.constant 0 : index
    %c0_9 = arith.constant 0 : index
    %c0_10 = arith.constant 0 : index
    %c0_11 = arith.constant 0 : index
    %9 = vector.load %arg5[%c0_8, %c0_9, %c0_10, %c0_11] : memref<1x4x128x32xf32, #tpu.memory_space<vmem>>, vector<1x4x128x32xf32>
    %10 = vector.shape_cast %9 : vector<1x4x128x32xf32> to vector<4x128x32xf32>
    "tpu.trace_start"() <{level = 10 : i32, message = "hle,hes->hls"}> : () -> ()
    %cst_12 = arith.constant dense<0.000000e+00> : vector<4x8x128xf32>
    %11 = tpu.matmul %6, %8, %cst_12 {dimension_numbers = #tpu.dot_dimension_numbers<[2], [1], [1], [2], [0, 0, 0, 1, 1, 2], [0], [0]>} : vector<4x8x32xf32>, vector<4x32x128xf32>, vector<4x8x128xf32> -> vector<4x8x128xf32>
    "tpu.trace_stop"() : () -> ()
    %c0_13 = arith.constant 0 : index
    %c0_14 = arith.constant 0 : index
    %c0_15 = arith.constant 0 : index
    %12 = vector.load %arg7[%c0_13, %c0_14, %c0_15] : memref<4x8x1xf32, #tpu.memory_space<vmem>>, vector<4x8x1xf32>
    %cst_16 = arith.constant dense<0xFF800000> : vector<4x8xf32>
    %13 = vector.multi_reduction <maximumf>, %11, %cst_16 [2] : vector<4x8x128xf32> to vector<4x8xf32>
    %14 = vector.shape_cast %13 : vector<4x8xf32> to vector<4x8x1xf32>
    %15 = arith.maximumf %12, %14 : vector<4x8x1xf32>
    %16 = arith.subf %12, %15 : vector<4x8x1xf32>
    %17 = math.exp %16 : vector<4x8x1xf32>
    %18 = vector.broadcast %15 : vector<4x8x1xf32> to vector<4x8x128xf32>
    %19 = arith.subf %11, %18 : vector<4x8x128xf32>
    %20 = math.exp %19 : vector<4x8x128xf32>
    %c0_17 = arith.constant 0 : index
    %c0_18 = arith.constant 0 : index
    %c0_19 = arith.constant 0 : index
    %21 = vector.load %arg8[%c0_17, %c0_18, %c0_19] : memref<4x8x1xf32, #tpu.memory_space<vmem>>, vector<4x8x1xf32>
    %22 = arith.mulf %17, %21 : vector<4x8x1xf32>
    %cst_20 = arith.constant dense<0.000000e+00> : vector<4x8xf32>
    %23 = vector.multi_reduction <add>, %20, %cst_20 [2] : vector<4x8x128xf32> to vector<4x8xf32>
    %24 = vector.shape_cast %23 : vector<4x8xf32> to vector<4x8x1xf32>
    %25 = arith.addf %22, %24 : vector<4x8x1xf32>
    %c0_21 = arith.constant 0 : index
    %c0_22 = arith.constant 0 : index
    %c0_23 = arith.constant 0 : index
    %26 = vector.load %arg8[%c0_21, %c0_22, %c0_23] : memref<4x8x1xf32, #tpu.memory_space<vmem>>, vector<4x8x1xf32>
    tpu.vector_store %arg8[%c0_21, %c0_22, %c0_23], %25 {strides = array<i32>} : memref<4x8x1xf32, #tpu.memory_space<vmem>>, vector<4x8x1xf32>,
    %c0_24 = arith.constant 0 : index
    %c0_25 = arith.constant 0 : index
    %c0_26 = arith.constant 0 : index
    %27 = vector.load %arg9[%c0_24, %c0_25, %c0_26] : memref<4x8x32xf32, #tpu.memory_space<vmem>>, vector<4x8x32xf32>
    %28 = vector.broadcast %17 : vector<4x8x1xf32> to vector<4x8x32xf32>
    %29 = arith.mulf %28, %27 : vector<4x8x32xf32>
    "tpu.trace_start"() <{level = 10 : i32, message = "hls,hsd->hld"}> : () -> ()
    %cst_27 = arith.constant dense<0.000000e+00> : vector<4x8x32xf32>
    %30 = tpu.matmul %20, %10, %cst_27 {dimension_numbers = #tpu.dot_dimension_numbers<[2], [1], [1], [2], [0, 0, 0, 1, 1, 2], [0], [0]>} : vector<4x8x128xf32>, vector<4x128x32xf32>, vector<4x8x32xf32> -> vector<4x8x32xf32>
    "tpu.trace_stop"() : () -> ()
    %31 = arith.addf %29, %30 : vector<4x8x32xf32>
    %c0_28 = arith.constant 0 : index
    %c0_29 = arith.constant 0 : index
    %c0_30 = arith.constant 0 : index
    %32 = vector.load %arg9[%c0_28, %c0_29, %c0_30] : memref<4x8x32xf32, #tpu.memory_space<vmem>>, vector<4x8x32xf32>
    tpu.vector_store %arg9[%c0_28, %c0_29, %c0_30], %31 {strides = array<i32>} : memref<4x8x32xf32, #tpu.memory_space<vmem>>, vector<4x8x32xf32>,
    %c0_31 = arith.constant 0 : index
    %c0_32 = arith.constant 0 : index
    %c0_33 = arith.constant 0 : index
    %33 = vector.load %arg7[%c0_31, %c0_32, %c0_33] : memref<4x8x1xf32, #tpu.memory_space<vmem>>, vector<4x8x1xf32>
    tpu.vector_store %arg7[%c0_31, %c0_32, %c0_33], %15 {strides = array<i32>} : memref<4x8x1xf32, #tpu.memory_space<vmem>>, vector<4x8x1xf32>,
    %c1_i32 = arith.constant 1 : i32
    %34 = arith.cmpi eq, %arg2, %c1_i32 : i32
    %35 = arith.extui %34 : i1 to i32
    %c0_i32_34 = arith.constant 0 : i32
    %36 = arith.cmpi ne, %35, %c0_i32_34 : i32
    scf.if %36 {
      %c0_35 = arith.constant 0 : index
      %c0_36 = arith.constant 0 : index
      %c0_37 = arith.constant 0 : index
      %37 = vector.load %arg8[%c0_35, %c0_36, %c0_37] : memref<4x8x1xf32, #tpu.memory_space<vmem>>, vector<4x8x1xf32>
      %38 = tpu.reciprocal %37 {approx = true} : vector<4x8x1xf32> -> vector<4x8x1xf32>
      %c0_38 = arith.constant 0 : index
      %c0_39 = arith.constant 0 : index
      %c0_40 = arith.constant 0 : index
      %39 = vector.load %arg9[%c0_38, %c0_39, %c0_40] : memref<4x8x32xf32, #tpu.memory_space<vmem>>, vector<4x8x32xf32>
      %40 = vector.broadcast %38 : vector<4x8x1xf32> to vector<4x8x32xf32>
      %41 = arith.mulf %39, %40 : vector<4x8x32xf32>
      %42 = vector.extract_strided_slice %41 {offsets = [0, 0, 0], sizes = [1, 8, 32], strides = [1, 1, 1]} : vector<4x8x32xf32> to vector<1x8x32xf32>
      %43 = vector.shape_cast %42 : vector<1x8x32xf32> to vector<8x32xf32>
      %44 = vector.extract_strided_slice %41 {offsets = [1, 0, 0], sizes = [1, 8, 32], strides = [1, 1, 1]} : vector<4x8x32xf32> to vector<1x8x32xf32>
      %45 = vector.shape_cast %44 : vector<1x8x32xf32> to vector<8x32xf32>
      %46 = vector.extract_strided_slice %41 {offsets = [2, 0, 0], sizes = [1, 8, 32], strides = [1, 1, 1]} : vector<4x8x32xf32> to vector<1x8x32xf32>
      %47 = vector.shape_cast %46 : vector<1x8x32xf32> to vector<8x32xf32>
      %48 = vector.extract_strided_slice %41 {offsets = [3, 0, 0], sizes = [1, 8, 32], strides = [1, 1, 1]} : vector<4x8x32xf32> to vector<1x8x32xf32>
      %49 = vector.shape_cast %48 : vector<1x8x32xf32> to vector<8x32xf32>
      %50 = tpu.concatenate %43, %45, %47, %49 in 1 : vector<8x32xf32>, vector<8x32xf32>, vector<8x32xf32>, vector<8x32xf32> -> vector<8x128xf32>
      %c0_41 = arith.constant 0 : index
      %c0_42 = arith.constant 0 : index
      %c0_43 = arith.constant 0 : index
      %51 = vector.load %arg6[%c0_41, %c0_42, %c0_43] : memref<1x8x128xf32, #tpu.memory_space<vmem>>, vector<1x8x128xf32>
      %52 = vector.shape_cast %51 : vector<1x8x128xf32> to vector<8x128xf32>
      %53 = vector.shape_cast %50 : vector<8x128xf32> to vector<1x8x128xf32>
      tpu.vector_store %arg6[%c0_41, %c0_42, %c0_43], %53 {strides = array<i32>} : memref<1x8x128xf32, #tpu.memory_space<vmem>>, vector<1x8x128xf32>,
    } else {
    }
    return
  }
  func.func @transform_0(%arg0: i32, %arg1: i32, %arg2: i32) -> (i32, i32, i32, i32) {
    %c0_i32 = arith.constant 0 : i32
    %c0_i32_0 = arith.constant 0 : i32
    %c0_i32_1 = arith.constant 0 : i32
    return %arg0, %arg1, %c0_i32, %c0_i32_0 : i32, i32, i32, i32
  }
  func.func @transform_1(%arg0: i32, %arg1: i32, %arg2: i32) -> (i32, i32, i32, i32) {
    %c0_i32 = arith.constant 0 : i32
    %c0_i32_0 = arith.constant 0 : i32
    return %arg0, %arg1, %c0_i32, %arg2 : i32, i32, i32, i32
  }
  func.func @transform_2(%arg0: i32, %arg1: i32, %arg2: i32) -> (i32, i32, i32, i32) {
    %c0_i32 = arith.constant 0 : i32
    %c0_i32_0 = arith.constant 0 : i32
    return %arg0, %arg1, %arg2, %c0_i32 : i32, i32, i32, i32
  }
  func.func @transform_3(%arg0: i32, %arg1: i32, %arg2: i32) -> (i32, i32, i32) {
    %c0_i32 = arith.constant 0 : i32
    %c0_i32_0 = arith.constant 0 : i32
    return %arg0, %c0_i32, %arg1 : i32, i32, i32
  }
}

</mosaic_0001>

<bundles_post_ra>
// kernel: tpu_custom_call.1
= control target key start
LH: loop header
LB: loop body
LE: loop exit
PB: predicated region body
PF: predicated region fallthrough
CT: control target
= control target key end

     0   :  { %s2800_s0 = inlined_call_operand.vmem [shape: f32[2,4,8,32], index: 0, kind: input, shape index: {}]   ;;  %s2801_s1 = inlined_call_operand.vmem [shape: f32[2,4,32,256], index: 1, kind: input, shape index: {}]   ;;  %s2802_s2 = inlined_call_operand.vmem [shape: f32[2,4,256,32], index: 2, kind: input, shape index: {}]   ;;  %s2803_s3 = inlined_call_operand.hbm [shape: f32[2,8,128], index: 3, kind: output, shape index: {}]  }
   0x1   :  { %2804 = sst [smem:[#allocation10_spill]] %s2801_s1 }
   0x2   :  { %8 = vsyncpa [#allocation8], 0 }
   0x3   :  { %10 = vsyncpa [#allocation8 + $0x1], 0  ;;  %s2216_s12 = smov 0   ;;  %s2218_s13 = smov 0  }
   0x4   :  { %s2220_s14 = smov 0   ;;  %s2222_s15 = smov 0  }
   0x5   :  { %s2224_s16 = smov 0   ;;  %s2226_s17 = smov 0  }
   0x6   :  { %s2228_s18 = smov 0   ;;  %s2230_s19 = smov 0  }
   0x7   :  { %s2232_s20 = smov 0   ;;  %s2234_s21 = smov 0  }
   0x8 LB: > { %s1652_s22 = sadd.s32 4294967295, %s2184_s21   ;;  %s1653_s23 = sadd.s32 4294967294, %s2184_s21   ;;  %s2184_s21 = sphi %s2234_s21, %s16_s21   ;;  %s2180_s20 = sphi %s2232_s20, %s2817_s20   ;;  %s2176_s19 = sphi %s2230_s19, %s2816_s19   ;;  %s2172_s18 = sphi %s2228_s18, %s2815_s18   ;;  %s2168_s17 = sphi %s2226_s17, %s2814_s17   ;;  %s2164_s16 = sphi %s2224_s16, %s2813_s16   ;;  %s2160_s15 = sphi %s2222_s15, %s2812_s15   ;;  %s2156_s14 = sphi %s2220_s14, %s2811_s14   ;;  %s2152_s13 = sphi %s2218_s13, %s2810_s13   ;;  %s2148_s12 = sphi %s2216_s12, %s2809_s12  }
   0x9   : > { %s28_s24 = sadd.s32 1, %s2176_s19  ;;  %s35_s25 = sadd.s32 1, %s2180_s20 }
   0xa   : > { %p29_p0 = scmp.ge.s32.totalorder %s28_s24, 2  ;;  %s74_s26 = sadd.s32 1, %s2164_s16 }
   0xb   : > { %p81_p1 = scmp.ne.s32.totalorder %s2164_s16, %s2160_s15  ;;  %p82_p2 = scmp.eq.s32.totalorder %s2184_s21, 0 }
   0xc   : > { %s2819_s24 = smov (%p29_p0, %s28_s24), 0  ;;  %s2821_s25 = smov (!%p29_p0, %s35_s25), %s2180_s20 }
   0xd   : > { %s70_s27 = ssub.s32 %s2176_s19, %s2819_s24  ;;  %p2279_p3 = por %p82_p2, %p81_p1 }
   0xe   : > { %p37_p4 = scmp.ge.s32.totalorder %s2821_s25, 2  ;;  %s132_s29 = sadd.s32 1, %s2156_s14 }
   0xf   : > { %p142_p5 = scmp.ne.s32.totalorder %s2156_s14, %s2152_s13  ;;  %p143_p6 = scmp.eq.s32.totalorder %s1652_s22, 3 }
  0x10   : > { %s2823_s25 = smov (%p37_p4, %s2821_s25), 0  ;;  %p148_p8 = scmp.ne.s32.totalorder %s2152_s13, %s2148_s12 }
  0x11   : > { %p2288_p7 = por %p143_p6, %p142_p5  ;;  %s67_s4 = ssub.s32 %s2180_s20, %s2823_s25 }
  0x12   : > { %p149_p9 = scmp.eq.s32.totalorder %s1653_s23, 3  ;;  %s71_s5 = sor.u32 %s70_s27, %s67_s4 }
  0x13   : > { %p130_p10 = scmp.eq.s32.totalorder %s67_s4, 0  ;;  %p72_p11 = scmp.eq.s32.totalorder %s71_s5, 0 }
  0x14   : > { %p2296_p12 = por %p149_p9, %p148_p8  ;;  %p1655_p13 = scmp.ge.s32.totalorder %s2184_s21, 4 }
  0x15   : > { %s2301_s7 = scalar_select %p130_p10, %s2156_s14, %s132_s29  }
  0x16   : > { %s2304_s8 = scalar_select %p72_p11, %s2164_s16, %s74_s26  }
  0x17   : > { %165 = sbr.rel (%p1655_p13) target bundleno = 85 (0x55), region = 16 }
  0x1c   : > { %181 = sbr.rel (!%p2279_p3) target bundleno = 46 (0x2e), region = 24  ;;  %s183_s9 = sand.u32 (%p2279_p3), 1, %s2164_s16  }
  0x1d   : > { %s1657_s10 = sshll.u32 (%p2279_p3), %s2180_s20, 5  ;;  %s1656_s11 = sshll.u32 (%p2279_p3), %s183_s9, 7 }
  0x1e   : > { %s190_s22 = sadd.s32 (%p2279_p3), %s2176_s19, %s1657_s10  ;;  %s2808_s1 = sld [smem:[#allocation10_spill]] (%p2279_p3) }
  0x1f   : > { %s1658_s23 = sshll.u32 (%p2279_p3), %s190_s22, 3  ;;  %s185_s26 = scalar_lea.vmem (%p2279_p3), [#allocation5], %s1656_s11 }
  0x24   : > { %s2315_s29 = scalar_lea.vmem %s2808_s1, %s1658_s23 }
  0x25   : > { %v251_v0 = vld [vmem:[%s2315_s29] sm:$0xff]  ;;  %v253_v1 = vld [vmem:[%s2315_s29 + $0x10] sm:$0xff] }
  0x26   : > { %v255_v2 = vld [vmem:[%s2315_s29 + $0x20] sm:$0xff]  ;;  %252 = vst [vmem:[%s185_s26] sm:$0xff] %v251_v0  ;;  %254 = vst [vmem:[%s185_s26 + $0x8] sm:$0xff] %v253_v1  ;;  %v257_v3 = vld [vmem:[%s2315_s29 + $0x30] sm:$0xff] }
  0x27   : > { %256 = vst [vmem:[%s185_s26 + $0x10] sm:$0xff] %v255_v2  ;;  %v259_v4 = vld [vmem:[%s2315_s29 + $0x40] sm:$0xff]  ;;  %v261_v5 = vld [vmem:[%s2315_s29 + $0x50] sm:$0xff]  ;;  %258 = vst [vmem:[%s185_s26 + $0x18] sm:$0xff] %v257_v3 }
  0x28   : > { %260 = vst [vmem:[%s185_s26 + $0x20] sm:$0xff] %v259_v4  ;;  %262 = vst [vmem:[%s185_s26 + $0x28] sm:$0xff] %v261_v5  ;;  %v263_v6 = vld [vmem:[%s2315_s29 + $0x60] sm:$0xff]  ;;  %v265_v7 = vld [vmem:[%s2315_s29 + $0x70] sm:$0xff] }
  0x29   : > { %v267_v8 = vld [vmem:[%s2315_s29 + $0x80] sm:$0xff]  ;;  %264 = vst [vmem:[%s185_s26 + $0x30] sm:$0xff] %v263_v6  ;;  %266 = vst [vmem:[%s185_s26 + $0x38] sm:$0xff] %v265_v7  ;;  %v269_v9 = vld [vmem:[%s2315_s29 + $0x90] sm:$0xff] }
  0x2a   : > { %268 = vst [vmem:[%s185_s26 + $0x40] sm:$0xff] %v267_v8  ;;  %v271_v10 = vld [vmem:[%s2315_s29 + $0xa0] sm:$0xff]  ;;  %v273_v11 = vld [vmem:[%s2315_s29 + $0xb0] sm:$0xff]  ;;  %270 = vst [vmem:[%s185_s26 + $0x48] sm:$0xff] %v269_v9 }
  0x2b   : > { %272 = vst [vmem:[%s185_s26 + $0x50] sm:$0xff] %v271_v10  ;;  %274 = vst [vmem:[%s185_s26 + $0x58] sm:$0xff] %v273_v11  ;;  %v275_v12 = vld [vmem:[%s2315_s29 + $0xc0] sm:$0xff]  ;;  %v277_v13 = vld [vmem:[%s2315_s29 + $0xd0] sm:$0xff] }
  0x2c   : > { %v279_v14 = vld [vmem:[%s2315_s29 + $0xe0] sm:$0xff]  ;;  %276 = vst [vmem:[%s185_s26 + $0x60] sm:$0xff] %v275_v12  ;;  %278 = vst [vmem:[%s185_s26 + $0x68] sm:$0xff] %v277_v13  ;;  %v281_v15 = vld [vmem:[%s2315_s29 + $0xf0] sm:$0xff] }
  0x2d   : > { %280 = vst [vmem:[%s185_s26 + $0x70] sm:$0xff] %v279_v14  ;;  %282 = vst [vmem:[%s185_s26 + $0x78] sm:$0xff] %v281_v15 }
  0x2e PF: > { %288 = sbr.rel (!%p2279_p3) target bundleno = 85 (0x55), region = 62  ;;  %s290_s5 = sand.u32 (%p2279_p3), 1, %s2164_s16  }
  0x2f   : > { %s1660_s9 = sshll.u32 (%p2279_p3), %s2176_s19, 4  ;;  %s1659_s10 = sshll.u32 (%p2279_p3), %s290_s5, 9 }
  0x30   : > { %s1661_s11 = sshll.u32 (%p2279_p3), %s2180_s20, 7  ;;  %s2346_s28 = scalar_lea.vmem (%p2279_p3), [#allocation6], %s1659_s10 }
  0x31   : > { %s298_s22 = sadd.s32 (%p2279_p3), %s1661_s11, %s1660_s9 }
  0x32   : > { %s1662_s23 = sshll.u32 (%p2279_p3), %s298_s22, 3 }
  0x33   : > { %s2341_s1 = scalar_lea.vmem %s2802_s2, %s1662_s23 }
  0x34   : > { %v455_v16 = vld [vmem:[%s2341_s1] sm:$0xff]  ;;  %v457_v17 = vld [vmem:[%s2341_s1 + $0x8] sm:$0xff]  ;;  %v459_v18 = vld [vmem:[%s2341_s1 + $0x10] sm:$0xff] }
  0x35   : > { %456 = vst [vmem:[%s2346_s28] sm:$0xff] %v455_v16  ;;  %458 = vst [vmem:[%s2346_s28 + $0x8] sm:$0xff] %v457_v17  ;;  %v461_v19 = vld [vmem:[%s2341_s1 + $0x18] sm:$0xff]  ;;  %v463_v20 = vld [vmem:[%s2341_s1 + $0x20] sm:$0xff] }
  0x36   : > { %460 = vst [vmem:[%s2346_s28 + $0x10] sm:$0xff] %v459_v18  ;;  %v465_v21 = vld [vmem:[%s2341_s1 + $0x28] sm:$0xff]  ;;  %462 = vst [vmem:[%s2346_s28 + $0x18] sm:$0xff] %v461_v19  ;;  %v467_v22 = vld [vmem:[%s2341_s1 + $0x30] sm:$0xff] }
  0x37   : > { %464 = vst [vmem:[%s2346_s28 + $0x20] sm:$0xff] %v463_v20  ;;  %466 = vst [vmem:[%s2346_s28 + $0x28] sm:$0xff] %v465_v21  ;;  %v469_v23 = vld [vmem:[%s2341_s1 + $0x38] sm:$0xff]  ;;  %v471_v24 = vld [vmem:[%s2341_s1 + $0x40] sm:$0xff] }
  0x38   : > { %468 = vst [vmem:[%s2346_s28 + $0x30] sm:$0xff] %v467_v22  ;;  %470 = vst [vmem:[%s2346_s28 + $0x38] sm:$0xff] %v469_v23  ;;  %v473_v25 = vld [vmem:[%s2341_s1 + $0x48] sm:$0xff]  ;;  %v475_v26 = vld [vmem:[%s2341_s1 + $0x50] sm:$0xff] }
  0x39   : > { %472 = vst [vmem:[%s2346_s28 + $0x40] sm:$0xff] %v471_v24  ;;  %v477_v27 = vld [vmem:[%s2341_s1 + $0x58] sm:$0xff]  ;;  %474 = vst [vmem:[%s2346_s28 + $0x48] sm:$0xff] %v473_v25  ;;  %v479_v28 = vld [vmem:[%s2341_s1 + $0x60] sm:$0xff] }
  0x3a   : > { %476 = vst [vmem:[%s2346_s28 + $0x50] sm:$0xff] %v475_v26  ;;  %478 = vst [vmem:[%s2346_s28 + $0x58] sm:$0xff] %v477_v27  ;;  %v481_v29 = vld [vmem:[%s2341_s1 + $0x68] sm:$0xff]  ;;  %v483_v30 = vld [vmem:[%s2341_s1 + $0x70] sm:$0xff] }
  0x3b   : > { %480 = vst [vmem:[%s2346_s28 + $0x60] sm:$0xff] %v479_v28  ;;  %482 = vst [vmem:[%s2346_s28 + $0x68] sm:$0xff] %v481_v29  ;;  %v485_v31 = vld [vmem:[%s2341_s1 + $0x78] sm:$0xff]  ;;  %v487_v32 = vld [vmem:[%s2341_s1 + $0x100] sm:$0xff] }
  0x3c   : > { %484 = vst [vmem:[%s2346_s28 + $0x70] sm:$0xff] %v483_v30  ;;  %v489_v33 = vld [vmem:[%s2341_s1 + $0x108] sm:$0xff]  ;;  %486 = vst [vmem:[%s2346_s28 + $0x78] sm:$0xff] %v485_v31  ;;  %v491_v34 = vld [vmem:[%s2341_s1 + $0x110] sm:$0xff] }
  0x3d   : > { %488 = vst [vmem:[%s2346_s28 + $0x80] sm:$0xff] %v487_v32  ;;  %490 = vst [vmem:[%s2346_s28 + $0x88] sm:$0xff] %v489_v33  ;;  %v493_v35 = vld [vmem:[%s2341_s1 + $0x118] sm:$0xff]  ;;  %v495_v36 = vld [vmem:[%s2341_s1 + $0x120] sm:$0xff] }
  0x3e   : > { %492 = vst [vmem:[%s2346_s28 + $0x90] sm:$0xff] %v491_v34  ;;  %494 = vst [vmem:[%s2346_s28 + $0x98] sm:$0xff] %v493_v35  ;;  %v497_v37 = vld [vmem:[%s2341_s1 + $0x128] sm:$0xff]  ;;  %v499_v38 = vld [vmem:[%s2341_s1 + $0x130] sm:$0xff] }
  0x3f   : > { %496 = vst [vmem:[%s2346_s28 + $0xa0] sm:$0xff] %v495_v36  ;;  %v501_v39 = vld [vmem:[%s2341_s1 + $0x138] sm:$0xff]  ;;  %498 = vst [vmem:[%s2346_s28 + $0xa8] sm:$0xff] %v497_v37  ;;  %v503_v40 = vld [vmem:[%s2341_s1 + $0x140] sm:$0xff] }
  0x40   : > { %500 = vst [vmem:[%s2346_s28 + $0xb0] sm:$0xff] %v499_v38  ;;  %502 = vst [vmem:[%s2346_s28 + $0xb8] sm:$0xff] %v501_v39  ;;  %v505_v41 = vld [vmem:[%s2341_s1 + $0x148] sm:$0xff]  ;;  %v507_v42 = vld [vmem:[%s2341_s1 + $0x150] sm:$0xff] }
  0x41   : > { %504 = vst [vmem:[%s2346_s28 + $0xc0] sm:$0xff] %v503_v40  ;;  %506 = vst [vmem:[%s2346_s28 + $0xc8] sm:$0xff] %v505_v41  ;;  %v509_v43 = vld [vmem:[%s2341_s1 + $0x158] sm:$0xff]  ;;  %v511_v44 = vld [vmem:[%s2341_s1 + $0x160] sm:$0xff] }
  0x42   : > { %508 = vst [vmem:[%s2346_s28 + $0xd0] sm:$0xff] %v507_v42  ;;  %v513_v45 = vld [vmem:[%s2341_s1 + $0x168] sm:$0xff]  ;;  %510 = vst [vmem:[%s2346_s28 + $0xd8] sm:$0xff] %v509_v43  ;;  %v515_v46 = vld [vmem:[%s2341_s1 + $0x170] sm:$0xff] }
  0x43   : > { %512 = vst [vmem:[%s2346_s28 + $0xe0] sm:$0xff] %v511_v44  ;;  %514 = vst [vmem:[%s2346_s28 + $0xe8] sm:$0xff] %v513_v45  ;;  %v517_v47 = vld [vmem:[%s2341_s1 + $0x178] sm:$0xff]  ;;  %v519_v48 = vld [vmem:[%s2341_s1 + $0x200] sm:$0xff] }
  0x44   : > { %516 = vst [vmem:[%s2346_s28 + $0xf0] sm:$0xff] %v515_v46  ;;  %518 = vst [vmem:[%s2346_s28 + $0xf8] sm:$0xff] %v517_v47  ;;  %v521_v49 = vld [vmem:[%s2341_s1 + $0x208] sm:$0xff]  ;;  %v523_v50 = vld [vmem:[%s2341_s1 + $0x210] sm:$0xff] }
  0x45   : > { %520 = vst [vmem:[%s2346_s28 + $0x100] sm:$0xff] %v519_v48  ;;  %v525_v51 = vld [vmem:[%s2341_s1 + $0x218] sm:$0xff]  ;;  %522 = vst [vmem:[%s2346_s28 + $0x108] sm:$0xff] %v521_v49  ;;  %v527_v52 = vld [vmem:[%s2341_s1 + $0x220] sm:$0xff] }
  0x46   : > { %524 = vst [vmem:[%s2346_s28 + $0x110] sm:$0xff] %v523_v50  ;;  %526 = vst [vmem:[%s2346_s28 + $0x118] sm:$0xff] %v525_v51  ;;  %v529_v53 = vld [vmem:[%s2341_s1 + $0x228] sm:$0xff]  ;;  %v531_v54 = vld [vmem:[%s2341_s1 + $0x230] sm:$0xff] }
  0x47   : > { %528 = vst [vmem:[%s2346_s28 + $0x120] sm:$0xff] %v527_v52  ;;  %530 = vst [vmem:[%s2346_s28 + $0x128] sm:$0xff] %v529_v53  ;;  %v533_v55 = vld [vmem:[%s2341_s1 + $0x238] sm:$0xff]  ;;  %v535_v56 = vld [vmem:[%s2341_s1 + $0x240] sm:$0xff] }
  0x48   : > { %532 = vst [vmem:[%s2346_s28 + $0x130] sm:$0xff] %v531_v54  ;;  %v537_v57 = vld [vmem:[%s2341_s1 + $0x248] sm:$0xff]  ;;  %534 = vst [vmem:[%s2346_s28 + $0x138] sm:$0xff] %v533_v55  ;;  %v539_v58 = vld [vmem:[%s2341_s1 + $0x250] sm:$0xff] }
  0x49   : > { %536 = vst [vmem:[%s2346_s28 + $0x140] sm:$0xff] %v535_v56  ;;  %538 = vst [vmem:[%s2346_s28 + $0x148] sm:$0xff] %v537_v57  ;;  %v541_v59 = vld [vmem:[%s2341_s1 + $0x258] sm:$0xff]  ;;  %v543_v60 = vld [vmem:[%s2341_s1 + $0x260] sm:$0xff] }
  0x4a   : > { %540 = vst [vmem:[%s2346_s28 + $0x150] sm:$0xff] %v539_v58  ;;  %542 = vst [vmem:[%s2346_s28 + $0x158] sm:$0xff] %v541_v59  ;;  %v545_v61 = vld [vmem:[%s2341_s1 + $0x268] sm:$0xff]  ;;  %v547_v62 = vld [vmem:[%s2341_s1 + $0x270] sm:$0xff] }
  0x4b   : > { %544 = vst [vmem:[%s2346_s28 + $0x160] sm:$0xff] %v543_v60  ;;  %v549_v63 = vld [vmem:[%s2341_s1 + $0x278] sm:$0xff]  ;;  %546 = vst [vmem:[%s2346_s28 + $0x168] sm:$0xff] %v545_v61  ;;  %v551_v0 = vld [vmem:[%s2341_s1 + $0x300] sm:$0xff] }
  0x4c   : > { %548 = vst [vmem:[%s2346_s28 + $0x170] sm:$0xff] %v547_v62  ;;  %550 = vst [vmem:[%s2346_s28 + $0x178] sm:$0xff] %v549_v63  ;;  %v553_v1 = vld [vmem:[%s2341_s1 + $0x308] sm:$0xff]  ;;  %v555_v2 = vld [vmem:[%s2341_s1 + $0x310] sm:$0xff] }
  0x4d   : > { %552 = vst [vmem:[%s2346_s28 + $0x180] sm:$0xff] %v551_v0  ;;  %554 = vst [vmem:[%s2346_s28 + $0x188] sm:$0xff] %v553_v1  ;;  %v557_v3 = vld [vmem:[%s2341_s1 + $0x318] sm:$0xff]  ;;  %v559_v4 = vld [vmem:[%s2341_s1 + $0x320] sm:$0xff] }
  0x4e   : > { %556 = vst [vmem:[%s2346_s28 + $0x190] sm:$0xff] %v555_v2  ;;  %v561_v5 = vld [vmem:[%s2341_s1 + $0x328] sm:$0xff]  ;;  %558 = vst [vmem:[%s2346_s28 + $0x198] sm:$0xff] %v557_v3  ;;  %v563_v6 = vld [vmem:[%s2341_s1 + $0x330] sm:$0xff] }
  0x4f   : > { %560 = vst [vmem:[%s2346_s28 + $0x1a0] sm:$0xff] %v559_v4  ;;  %562 = vst [vmem:[%s2346_s28 + $0x1a8] sm:$0xff] %v561_v5  ;;  %v565_v7 = vld [vmem:[%s2341_s1 + $0x338] sm:$0xff]  ;;  %v567_v8 = vld [vmem:[%s2341_s1 + $0x340] sm:$0xff] }
  0x50   : > { %564 = vst [vmem:[%s2346_s28 + $0x1b0] sm:$0xff] %v563_v6  ;;  %566 = vst [vmem:[%s2346_s28 + $0x1b8] sm:$0xff] %v565_v7  ;;  %v569_v9 = vld [vmem:[%s2341_s1 + $0x348] sm:$0xff]  ;;  %v571_v10 = vld [vmem:[%s2341_s1 + $0x350] sm:$0xff] }
  0x51   : > { %568 = vst [vmem:[%s2346_s28 + $0x1c0] sm:$0xff] %v567_v8  ;;  %v573_v11 = vld [vmem:[%s2341_s1 + $0x358] sm:$0xff]  ;;  %570 = vst [vmem:[%s2346_s28 + $0x1c8] sm:$0xff] %v569_v9  ;;  %v575_v12 = vld [vmem:[%s2341_s1 + $0x360] sm:$0xff] }
  0x52   : > { %572 = vst [vmem:[%s2346_s28 + $0x1d0] sm:$0xff] %v571_v10  ;;  %574 = vst [vmem:[%s2346_s28 + $0x1d8] sm:$0xff] %v573_v11  ;;  %v577_v13 = vld [vmem:[%s2341_s1 + $0x368] sm:$0xff]  ;;  %v579_v14 = vld [vmem:[%s2341_s1 + $0x370] sm:$0xff] }
  0x53   : > { %576 = vst [vmem:[%s2346_s28 + $0x1e0] sm:$0xff] %v575_v12  ;;  %578 = vst [vmem:[%s2346_s28 + $0x1e8] sm:$0xff] %v577_v13  ;;  %v581_v15 = vld [vmem:[%s2341_s1 + $0x378] sm:$0xff] }
  0x54   : > { %580 = vst [vmem:[%s2346_s28 + $0x1f0] sm:$0xff] %v579_v14  ;;  %582 = vst [vmem:[%s2346_s28 + $0x1f8] sm:$0xff] %v581_v15 }
  0x55 PF: > { %p1663_p0 = scmp.ge.s32.totalorder %s2184_s21, 1  ;;  %p587_p1 = scmp.lt.s32.totalorder %s2184_s21, 5 }
  0x57   : > { %p588_p2 = pnand %p1663_p0, %p587_p1 }
  0x58   : > { %s594_s29 = sand.u32 (!%p588_p2), 1, %s2160_s15   ;;  %s634_s26 = sand.u32 (!%p588_p2), 1, %s2152_s13  }
  0x59   : > { %591 = sbr.rel (%p588_p2) target bundleno = 1111 (0x457), region = 100  ;;  %s1664_s5 = sshll.u32 (!%p588_p2), %s594_s29, 7 }
  0x5a   : > { %s1665_s9 = sshll.u32 (!%p588_p2), %s594_s29, 9  ;;  %s2479_s1 = sshll.u32 (!%p588_p2), %s634_s26, 3 }
  0x5b   : > { %p638_p3 = scmp.lt.s32.totalorder (!%p588_p2), %s2172_s18, 1  ;;  %s2488_s4 = scalar_lea.vmem (!%p588_p2), [#allocation5], %s1664_s5 }
  0x5c   : > { %s2490_s28 = scalar_lea.vmem (!%p588_p2), [#allocation6], %s1665_s9  ;;  %s636_s15 = scalar_lea.vmem (!%p588_p2), [#allocation7], %s2479_s1 }
  0x5d   : > { %p1669_p4 = scmp.ne.s32.totalorder (!%p588_p2), %s2168_s17, 0 }
  0x5e   : > { %s639_s10 = scalar_select %p638_p3, %s2172_s18, 1 }
  0x5f   : > { %653 = sbr.rel (%p1669_p4) target bundleno = 107 (0x6b), region = 112 }
  0x60   : > { %s1679_s11 = sshll.u32 %s639_s10, 5 }
  0x61   : > { %s2486_s27 = scalar_lea.vmem %s2800_s0, %s1679_s11 }
  0x64   : > { %vm654_vm0 = vcmask 7168   ;;  %vm663_vm1 = vcmask 261120   ;;  %v2186_v16 = vmov -inf   ;;  %v2187_v17 = vmov 0.0  }
  0x65   : > { %655 = vst.msk [vmem:[#allocation2] sm:$0xff] %vm654_vm0, %v2186_v16  ;;  %656 = vst.msk [vmem:[#allocation2 + $0x8] sm:$0xff] %vm654_vm0, %v2186_v16 }
  0x66   : > { %657 = vst.msk [vmem:[#allocation2 + $0x10] sm:$0xff] %vm654_vm0, %v2186_v16  ;;  %658 = vst.msk [vmem:[#allocation2 + $0x18] sm:$0xff] %vm654_vm0, %v2186_v16 }
  0x67   : > { %659 = vst.msk [vmem:[#allocation3] sm:$0xff] %vm654_vm0, %v2187_v17  ;;  %660 = vst.msk [vmem:[#allocation3 + $0x8] sm:$0xff] %vm654_vm0, %v2187_v17 }
  0x68   : > { %661 = vst.msk [vmem:[#allocation3 + $0x10] sm:$0xff] %vm654_vm0, %v2187_v17  ;;  %662 = vst.msk [vmem:[#allocation3 + $0x18] sm:$0xff] %vm654_vm0, %v2187_v17 }
  0x69   : > { %664 = vst.msk [vmem:[#allocation4] sm:$0xff] %vm663_vm1, %v2187_v17  ;;  %665 = vst.msk [vmem:[#allocation4 + $0x8] sm:$0xff] %vm663_vm1, %v2187_v17 }
  0x6a   : > { %666 = vst.msk [vmem:[#allocation4 + $0x10] sm:$0xff] %vm663_vm1, %v2187_v17  ;;  %667 = vst.msk [vmem:[#allocation4 + $0x18] sm:$0xff] %vm663_vm1, %v2187_v17 }
  0x6b PF: > { %v679_v18 = vld [vmem:[%s2488_s4 + $0x18] sm:$0xff]  ;;  %v2188_v20 = vmov 0.0   ;;  %v678_v21 = vld [vmem:[%s2488_s4 + $0x10] sm:$0xff]  ;;  %v668_v23 = vld [vmem:[%s2486_s27] sm:$0xff]  ;;  %vm2189_vm2 = vmmov 0   ;;  %vm756_vm3 = vcmask 261120  }
  0x6c   : > { %v683_v19 = vld [vmem:[%s2488_s4 + $0x38] sm:$0xff]  ;;  %1768 = vmatprep.subr.mxu0 %v2188_v20  ;;  %1779 = vmatprep.subr.mxu1 %v2188_v20  ;;  %v682_v22 = vld [vmem:[%s2488_s4 + $0x30] sm:$0xff]  ;;  %v677_v24 = vld [vmem:[%s2488_s4 + $0x8] sm:$0xff]  ;;  %v672_v28 = vmul.f32 0.17677669, %v668_v23  ;;  %v2190_v50 = vmov 0  }
  0x6d   : > { %1769 = vmatpush3.msra.mxu0 %v679_v18  ;;  %1780 = vmatpush3.msra.mxu1 %v683_v19  ;;  %v681_v25 = vld [vmem:[%s2488_s4 + $0x28] sm:$0xff]  ;;  %v676_v27 = vld [vmem:[%s2488_s4] sm:$0xff]  ;;  %v687_v31 = vld [vmem:[%s2488_s4 + $0x58] sm:$0xff]  ;;  %vm1129_vm4 = vcmask 7168   ;;  %p1674_p5 = scmp.ne.s32.totalorder %s2168_s17, 1 }
  0x6e   : > { %1770 = vmatprep.subr.mxu0 %v2188_v20  ;;  %1781 = vmatprep.subr.mxu1 %v2188_v20  ;;  %v669_v26 = vld [vmem:[%s2486_s27 + $0x8] sm:$0xff]  ;;  %v680_v29 = vld [vmem:[%s2488_s4 + $0x20] sm:$0xff]  ;;  %v686_v32 = vld [vmem:[%s2488_s4 + $0x50] sm:$0xff]  ;;  %s2192_s17 = smov (!%p1674_p5), 32   ;;  %s2193_s29 = smov (!%p1674_p5), 64  }
  0x6f   : > { %1771 = vmatpush3.msra.mxu0 %v678_v21  ;;  %1782 = vmatpush3.msra.mxu1 %v682_v22  ;;  %v673_v30 = vmul.f32 0.17677669, %v669_v26  ;;  %v691_v33 = vld [vmem:[%s2488_s4 + $0x78] sm:$0xff]  ;;  %v670_v34 = vld [vmem:[%s2486_s27 + $0x10] sm:$0xff]  ;;  %v685_v35 = vld [vmem:[%s2488_s4 + $0x48] sm:$0xff]  ;;  %s2194_s5 = smov (!%p1674_p5), 96  }
  0x70   : > { %1772 = vmatprep.subr.mxu0 %v2188_v20  ;;  %1783 = vmatprep.subr.mxu1 %v2188_v20  ;;  %v690_v36 = vld [vmem:[%s2488_s4 + $0x70] sm:$0xff]  ;;  %v684_v37 = vld [vmem:[%s2488_s4 + $0x40] sm:$0xff]  ;;  %v674_v38 = vmul.f32 0.17677669, %v670_v34  ;;  %v671_v39 = vld [vmem:[%s2486_s27 + $0x18] sm:$0xff] }
  0x71   : > { %1773 = vmatpush3.msra.mxu0 %v677_v24  ;;  %1776 = vmatprep.mubr.msk.f32.mxu0 %vm2189_vm2, %v2188_v20  ;;  %v689_v40 = vld [vmem:[%s2488_s4 + $0x68] sm:$0xff]  ;;  %v688_v41 = vld [vmem:[%s2488_s4 + $0x60] sm:$0xff]  ;;  %v675_v42 = vmul.f32 0.17677669, %v671_v39  ;;  %v707_v52 = vld [vmem:[%s2490_s28 + $0x78] sm:$0xff] }
  0x72   : > { %1774 = vmatprep.subr.mxu0 %v2188_v20  ;;  %1784 = vmatpush3.msra.mxu1 %v681_v25  ;;  %v706_v53 = vld [vmem:[%s2490_s28 + $0x70] sm:$0xff]  ;;  %v723_v54 = vld [vmem:[%s2490_s28 + $0xf8] sm:$0xff]  ;;  %v705_v56 = vld [vmem:[%s2490_s28 + $0x68] sm:$0xff] }
  0x73   : > { %1775 = vmatpush3.msra.mxu0 %v676_v27  ;;  %1785 = vmatprep.subr.mxu1 %v2188_v20  ;;  %v722_v55 = vld [vmem:[%s2490_s28 + $0xf0] sm:$0xff]  ;;  %v721_v57 = vld [vmem:[%s2490_s28 + $0xe8] sm:$0xff]  ;;  %v704_v58 = vld [vmem:[%s2490_s28 + $0x60] sm:$0xff] }
  0x74   : > { %1777 = vmatmul.mubr.msk.f32.vlgmr.msra.gmra.mxu0 %vm756_vm3, %v672_v28  ;;  %1790 = vmatprep.subr.mxu0 %v2188_v20  ;;  %v720_v59 = vld [vmem:[%s2490_s28 + $0xe0] sm:$0xff]  ;;  %v703_v60 = vld [vmem:[%s2490_s28 + $0x58] sm:$0xff]  ;;  %v702_v62 = vld [vmem:[%s2490_s28 + $0x50] sm:$0xff] }
  0x75   : > { %1786 = vmatpush3.msra.mxu1 %v680_v29  ;;  %1787 = vmatprep.mubr.msk.f32.mxu1 %vm2189_vm2, %v2188_v20  ;;  %v719_v61 = vld [vmem:[%s2490_s28 + $0xd8] sm:$0xff]  ;;  %v701_v63 = vld [vmem:[%s2490_s28 + $0x48] sm:$0xff]  ;;  %v1049_v0 = vld [vmem:[#allocation2] sm:$0xff] }
  0x76   : > { %1791 = vmatpush3.msra.mxu0 %v687_v31  ;;  %1788 = vmatmul.mubr.msk.f32.vlgmr.msra.gmra.mxu1 %vm756_vm3, %v673_v30  ;;  %v700_v1 = vld [vmem:[%s2490_s28 + $0x40] sm:$0xff]  ;;  %v718_v2 = vld [vmem:[%s2490_s28 + $0xd0] sm:$0xff]  ;;  %v699_v5 = vld [vmem:[%s2490_s28 + $0x38] sm:$0xff] }
  0x77   : > { %1792 = vmatprep.subr.mxu0 %v2188_v20  ;;  %1801 = vmatprep.subr.mxu1 %v2188_v20  ;;  %v717_v6 = vld [vmem:[%s2490_s28 + $0xc8] sm:$0xff]  ;;  %v698_v9 = vld [vmem:[%s2490_s28 + $0x30] sm:$0xff]  ;;  %v716_v10 = vld [vmem:[%s2490_s28 + $0xc0] sm:$0xff] }
  0x78   : > { %1793 = vmatpush3.msra.mxu0 %v686_v32  ;;  %1802 = vmatpush3.msra.mxu1 %v691_v33  ;;  %v2590_v7 = vld [vmem:[#allocation2 + $0x8] sm:$0xff]  ;;  %v715_v15 = vld [vmem:[%s2490_s28 + $0xb8] sm:$0xff]  ;;  %v2609_v17 = vld [vmem:[#allocation2 + $0x10] sm:$0xff] }
  0x79   : > { %1794 = vmatprep.subr.mxu0 %v2188_v20  ;;  %1803 = vmatprep.subr.mxu1 %v2188_v20  ;;  %v697_v14 = vld [vmem:[%s2490_s28 + $0x28] sm:$0xff]  ;;  %v696_v18 = vld [vmem:[%s2490_s28 + $0x20] sm:$0xff]  ;;  %v714_v19 = vld [vmem:[%s2490_s28 + $0xb0] sm:$0xff] }
  0x7a   : > { %1795 = vmatpush3.msra.mxu0 %v685_v35  ;;  %1798 = vmatprep.mubr.msk.f32.mxu0 %vm2189_vm2, %v2188_v20  ;;  %v695_v22 = vld [vmem:[%s2490_s28 + $0x18] sm:$0xff]  ;;  %v713_v23 = vld [vmem:[%s2490_s28 + $0xa8] sm:$0xff]  ;;  %v694_v26 = vld [vmem:[%s2490_s28 + $0x10] sm:$0xff] }
  0x7b   : > { %1796 = vmatprep.subr.mxu0 %v2188_v20  ;;  %1804 = vmatpush3.msra.mxu1 %v690_v36  ;;  %v2620_v25 = vld [vmem:[#allocation2 + $0x18] sm:$0xff]  ;;  %v712_v27 = vld [vmem:[%s2490_s28 + $0xa0] sm:$0xff]  ;;  %v693_v30 = vld [vmem:[%s2490_s28 + $0x8] sm:$0xff] }
  0x7c   : > { %1797 = vmatpush3.msra.mxu0 %v684_v37  ;;  %1805 = vmatprep.subr.mxu1 %v2188_v20  ;;  %v711_v31 = vld [vmem:[%s2490_s28 + $0x98] sm:$0xff]  ;;  %v692_v33 = vld [vmem:[%s2490_s28] sm:$0xff]  ;;  %v710_v34 = vld [vmem:[%s2490_s28 + $0x90] sm:$0xff] }
  0x7d   : > { %1799 = vmatmul.mubr.msk.f32.vlgmr.msra.gmra.mxu0 %vm756_vm3, %v674_v38  ;;  %1806 = vmatpush3.msra.mxu1 %v689_v40  ;;  %v709_v36 = vld [vmem:[%s2490_s28 + $0x88] sm:$0xff]  ;;  %v708_v37 = vld [vmem:[%s2490_s28 + $0x80] sm:$0xff] }
  0x7e   : > { %1807 = vmatprep.subr.mxu1 %v2188_v20  ;;  %1809 = vmatprep.mubr.msk.f32.mxu1 %vm2189_vm2, %v2188_v20 }
  0x7f   : > { %1808 = vmatpush3.msra.mxu1 %v688_v41  ;;  %1812 = vmatprep.subr.mxu0 %v2188_v20 }
  0x80   : > { %1810 = vmatmul.mubr.msk.f32.vlgmr.msra.gmra.mxu1 %vm756_vm3, %v675_v42  ;;  %1847 = vmatprep.subr.mxu1 %v2188_v20 }
  0x81   : > { %1844 = vmatprep.mubr.msk.f32.mxu0 %vm2189_vm2, %v2188_v20  ;;  %1879 = vmatprep.mubr.msk.f32.mxu1 %vm2189_vm2, %v2188_v20 }
  0x82   : > { %2048 = vset.pattern.permute.xlu0 %v2190_v50  ;;  %2049 = vset.pattern.permute.xlu1 %v2190_v50 }
  0x83   : > { %1813 = vmatpush3.msra.mxu0 %v707_v52  ;;  %1848 = vmatpush3.msra.mxu1 %v723_v54  ;;  %v736_v54 = vld [vmem:[%s2490_s28 + $0x160] sm:$0xff] }
  0x84   : > { %1814 = vmatprep.subr.mxu0 %v2188_v20  ;;  %1849 = vmatprep.subr.mxu1 %v2188_v20 }
  0x85   : > { %1815 = vmatpush3.msra.mxu0 %v706_v53  ;;  %1850 = vmatpush3.msra.mxu1 %v722_v55  ;;  %v754_v55 = vld [vmem:[%s2490_s28 + $0x1f0] sm:$0xff] }
  0x86   : > { %1816 = vmatprep.subr.mxu0 %v2188_v20  ;;  %1851 = vmatprep.subr.mxu1 %v2188_v20 }
  0x87   : > { %1817 = vmatpush3.msra.mxu0 %v705_v56  ;;  %1852 = vmatpush3.msra.mxu1 %v721_v57  ;;  %v735_v56 = vld [vmem:[%s2490_s28 + $0x158] sm:$0xff] }
  0x88   : > { %1818 = vmatprep.subr.mxu0 %v2188_v20  ;;  %1853 = vmatprep.subr.mxu1 %v2188_v20 }
  0x89   : > { %1819 = vmatpush3.msra.mxu0 %v704_v58  ;;  %1854 = vmatpush3.msra.mxu1 %v720_v59  ;;  %v753_v58 = vld [vmem:[%s2490_s28 + $0x1e8] sm:$0xff]  ;;  %v734_v59 = vld [vmem:[%s2490_s28 + $0x150] sm:$0xff] }
  0x8a   : > { %1820 = vmatprep.subr.mxu0 %v2188_v20  ;;  %1855 = vmatprep.subr.mxu1 %v2188_v20 }
  0x8b   : > { %1821 = vmatpush3.msra.mxu0 %v703_v60  ;;  %1856 = vmatpush3.msra.mxu1 %v719_v61  ;;  %v752_v60 = vld [vmem:[%s2490_s28 + $0x1e0] sm:$0xff] }
  0x8c   : > { %1822 = vmatprep.subr.mxu0 %v2188_v20  ;;  %1857 = vmatprep.subr.mxu1 %v2188_v20 }
  0x8d   : > { %1823 = vmatpush3.msra.mxu0 %v702_v62  ;;  %1858 = vmatpush3.msra.mxu1 %v718_v2  ;;  %v733_v62 = vld [vmem:[%s2490_s28 + $0x148] sm:$0xff] }
  0x8e   : > { %1824 = vmatprep.subr.mxu0 %v2188_v20  ;;  %1859 = vmatprep.subr.mxu1 %v2188_v20 }
  0x8f   : > { %1825 = vmatpush3.msra.mxu0 %v701_v63  ;;  %1860 = vmatpush3.msra.mxu1 %v717_v6 }
  0x90   : > { %1826 = vmatprep.subr.mxu0 %v2188_v20  ;;  %1861 = vmatprep.subr.mxu1 %v2188_v20 }
  0x91   : > { %1827 = vmatpush3.msra.mxu0 %v700_v1  ;;  %1862 = vmatpush3.msra.mxu1 %v716_v10  ;;  %v732_v1 = vld [vmem:[%s2490_s28 + $0x140] sm:$0xff]  ;;  %v747_v10 = vld [vmem:[%s2490_s28 + $0x1b8] sm:$0xff] }
  0x92   : > { %1828 = vmatprep.subr.mxu0 %v2188_v20  ;;  %1863 = vmatprep.subr.mxu1 %v2188_v20 }
  0x93   : > { %1829 = vmatpush3.msra.mxu0 %v699_v5  ;;  %1864 = vmatpush3.msra.mxu1 %v715_v15  ;;  %v749_v5 = vld [vmem:[%s2490_s28 + $0x1c8] sm:$0xff] }
  0x94   : > { %1830 = vmatprep.subr.mxu0 %v2188_v20  ;;  %1865 = vmatprep.subr.mxu1 %v2188_v20  ;;  %v745_v15 = vld [vmem:[%s2490_s28 + $0x1a8] sm:$0xff] }
  0x95   : > { %1831 = vmatpush3.msra.mxu0 %v698_v9  ;;  %1866 = vmatpush3.msra.mxu1 %v714_v19  ;;  %v725_v19 = vld [vmem:[%s2490_s28 + $0x108] sm:$0xff] }
  0x96   : > { %1832 = vmatprep.subr.mxu0 %v2188_v20  ;;  %1867 = vmatprep.subr.mxu1 %v2188_v20 }
  0x97   : > { %1833 = vmatpush3.msra.mxu0 %v697_v14  ;;  %1868 = vmatpush3.msra.mxu1 %v713_v23  ;;  %v727_v14 = vld [vmem:[%s2490_s28 + $0x118] sm:$0xff]  ;;  %v742_v23 = vld [vmem:[%s2490_s28 + $0x190] sm:$0xff] }
  0x98   : > { %1834 = vmatprep.subr.mxu0 %v2188_v20  ;;  %1869 = vmatprep.subr.mxu1 %v2188_v20 }
  0x99   : > { %1835 = vmatpush3.msra.mxu0 %v696_v18  ;;  %1870 = vmatpush3.msra.mxu1 %v712_v27  ;;  %v740_v27 = vld [vmem:[%s2490_s28 + $0x180] sm:$0xff] }
  0x9a   : > { %1836 = vmatprep.subr.mxu0 %v2188_v20  ;;  %1871 = vmatprep.subr.mxu1 %v2188_v20 }
  0x9b   : > { %1837 = vmatpush3.msra.mxu0 %v695_v22  ;;  %1872 = vmatpush3.msra.mxu1 %v711_v31  ;;  %v724_v22 = vld [vmem:[%s2490_s28 + $0x100] sm:$0xff] }
  0x9c   : > { %1838 = vmatprep.subr.mxu0 %v2188_v20  ;;  %1873 = vmatprep.subr.mxu1 %v2188_v20 }
  0x9d   : > { %1839 = vmatpush3.msra.mxu0 %v694_v26  ;;  %1874 = vmatpush3.msra.mxu1 %v710_v34  ;;  %v741_v26 = vld [vmem:[%s2490_s28 + $0x188] sm:$0xff] }
  0x9e   : > { %1840 = vmatprep.subr.mxu0 %v2188_v20  ;;  %1875 = vmatprep.subr.mxu1 %v2188_v20 }
  0x9f   : > { %1841 = vmatpush3.msra.mxu0 %v693_v30  ;;  %1876 = vmatpush3.msra.mxu1 %v709_v36 }
  0xa0   : > { %1842 = vmatprep.subr.mxu0 %v2188_v20  ;;  %1877 = vmatprep.subr.mxu1 %v2188_v20 }
  0xa1   : > { %1843 = vmatpush3.msra.mxu0 %v692_v33  ;;  %1878 = vmatpush3.msra.mxu1 %v708_v37  ;;  %v1109_v33 = vld [vmem:[#allocation3] sm:$0xff]  ;;  %v1110_v37 = vld [vmem:[#allocation3 + $0x8] sm:$0xff] }
  0xa2   : > { %1882 = vmatprep.subr.mxu0 %v2188_v20  ;;  %1917 = vmatprep.subr.mxu1 %v2188_v20 }
 0x134   : > { %v2548_v43 = vpop.f32.mrf.mxu0 }
 0x135   : > { %1053 = vmax.xlane.f32.xlu0 %v2548_v43 }
 0x136   : > { %v1778_v44 = vpop.f32.mrf.mxu0  ;;  %v2551_v45 = vpop.f32.mrf.mxu1 }
 0x138   : > { %v1789_v46 = vpop.f32.mrf.mxu1 }
 0x139   : > { %1055 = vmax.xlane.f32.xlu0 %v2551_v45 }
 0x13d   : > { %v2554_v47 = vpop.f32.mrf.mxu0 }
 0x13e   : > { %1057 = vmax.xlane.f32.xlu1 %v2554_v47 }
 0x13f   : > { %v1800_v48 = vpop.f32.mrf.mxu0 }
 0x140   : > { %v2557_v49 = vpop.f32.mrf.mxu1  ;;  %v739_v48 = vld [vmem:[%s2490_s28 + $0x178] sm:$0xff] }
 0x142   : > { %1059 = vmax.xlane.f32.xlu1 %v2557_v49  ;;  %v1811_v51 = vpop.f32.mrf.mxu1 }
 0x143   : > { %v738_v51 = vld [vmem:[%s2490_s28 + $0x170] sm:$0xff] }
 0x1be   : > { %v1054_v3 = vpop.xlane.xlu0 %1053 }
 0x1bf   : > { %v1061_v4 = vmax.f32 %v1049_v0, %v1054_v3  ;;  %v750_v3 = vld [vmem:[%s2490_s28 + $0x1d0] sm:$0xff] }
 0x1c1   : > { %v1065_v8 = vsub.f32 %v1049_v0, %v1061_v4  ;;  %1450 = vst.msk [vmem:[#allocation2] sm:$0xff] %vm1129_vm4, %v1061_v4  ;;  %1079 = vperm.xlu0 %2048, %v1061_v4   ;;  %v751_v0 = vld [vmem:[%s2490_s28 + $0x1d8] sm:$0xff] }
 0x1c2   : > { %v1056_v11 = vpop.xlane.xlu0 %1055 }
 0x1c3   : > { %v1069_v12 = vmul.f32 1.442695, %v1065_v8  ;;  %v2598_v13 = vmax.f32 %v2590_v7, %v1056_v11  ;;  %v748_v8 = vld [vmem:[%s2490_s28 + $0x1c0] sm:$0xff] }
 0x1c5   : > { %2050 = vpow2.f32 %v1069_v12  ;;  %v1066_v16 = vsub.f32 %v2590_v7, %v2598_v13  ;;  %1451 = vst.msk [vmem:[#allocation2 + $0x8] sm:$0xff] %vm1129_vm4, %v2598_v13  ;;  %1084 = vperm.xlu1 %2049, %v2598_v13   ;;  %v730_v7 = vld [vmem:[%s2490_s28 + $0x130] sm:$0xff]  ;;  %v728_v12 = vld [vmem:[%s2490_s28 + $0x120] sm:$0xff] }
 0x1c6   : > { %v746_v13 = vld [vmem:[%s2490_s28 + $0x1b0] sm:$0xff] }
 0x1c7   : > { %v1058_v21 = vpop.xlane.xlu1 %1057  ;;  %v1071_v61 = vmul.f32 1.442695, %v1066_v16  ;;  %v726_v16 = vld [vmem:[%s2490_s28 + $0x110] sm:$0xff] }
 0x1c8   : > { %v1063_v24 = vmax.f32 %v2609_v17, %v1058_v21  ;;  %v743_v21 = vld [vmem:[%s2490_s28 + $0x198] sm:$0xff] }
 0x1ca   : > { %v1067_v28 = vsub.f32 %v2609_v17, %v1063_v24  ;;  %1452 = vst.msk [vmem:[#allocation2 + $0x10] sm:$0xff] %vm1129_vm4, %v1063_v24  ;;  %1089 = vperm.xlu1 %2049, %v1063_v24   ;;  %v744_v17 = vld [vmem:[%s2490_s28 + $0x1a0] sm:$0xff] }
 0x1cb   : > { %v1060_v29 = vpop.xlane.xlu1 %1059 }
 0x1cc   : > { %v2631_v32 = vmax.f32 %v2620_v25, %v1060_v29  ;;  %v1073_v52 = vmul.f32 1.442695, %v1067_v28 }
 0x1ce   : > { %v1068_v35 = vsub.f32 %v2620_v25, %v2631_v32  ;;  %1453 = vst.msk [vmem:[#allocation2 + $0x18] sm:$0xff] %vm1129_vm4, %v2631_v32  ;;  %1094 = vperm.xlu1 %2049, %v2631_v32   ;;  %v1134_v25 = vld [vmem:[#allocation4] sm:$0xff] }
 0x1d0   : > { %v1075_v29 = vmul.f32 1.442695, %v1068_v35  ;;  %v1111_v35 = vld [vmem:[#allocation3 + $0x10] sm:$0xff] }
 0x1d2   : > { %v2648_v38 = vpop.eup %2050 }
 0x1d3   : > { %1140 = vperm.xlu1 %2049, %v2648_v38   ;;  %v1113_v34 = vmul.f32 %v2648_v38, %v1109_v33  ;;  %v1135_v38 = vld [vmem:[#allocation4 + $0x8] sm:$0xff] }
 0x23c   : > { %v1080_v39 = vpop.permute.xlu0 %1079 }
 0x23d   : > { %v1097_v40 = vsub.f32 %v2548_v43, %v1080_v39  ;;  %v737_v43 = vld [vmem:[%s2490_s28 + $0x168] sm:$0xff] }
 0x23f   : > { %v1101_v41 = vmul.f32 1.442695, %v1097_v40 }
 0x240   : > { %v1085_v42 = vpop.permute.xlu1 %1084 }
 0x241   : > { %2052 = vpow2.f32 %v1101_v41  ;;  %v1098_v44 = vsub.f32 %v2551_v45, %v1085_v42  ;;  %v755_v45 = vld [vmem:[%s2490_s28 + $0x1f8] sm:$0xff] }
 0x243   : > { %v1103_v46 = vmul.f32 1.442695, %v1098_v44 }
 0x245   : > { %2054 = vpow2.f32 %v1103_v46  ;;  %v1090_v57 = vpop.permute.xlu1 %1089 }
 0x246   : > { %2056 = vpow2.f32 %v1073_v52  ;;  %v1099_v63 = vsub.f32 %v2554_v47, %v1090_v57  ;;  %v731_v47 = vld [vmem:[%s2490_s28 + $0x138] sm:$0xff] }
 0x247   : > { %2058 = vpow2.f32 %v1071_v61 }
 0x248   : > { %v1105_v4 = vmul.f32 1.442695, %v1099_v63  ;;  %v1137_v63 = vld [vmem:[#allocation4 + $0x18] sm:$0xff] }
 0x249   : > { %v1095_v2 = vpop.permute.xlu1 %1094 }
 0x24a   : > { %v1100_v6 = vsub.f32 %v2557_v49, %v1095_v2  ;;  %2060 = vpow2.f32 %v1105_v4  ;;  %v729_v49 = vld [vmem:[%s2490_s28 + $0x128] sm:$0xff] }
 0x24c   : > { %v1107_v11 = vmul.f32 1.442695, %v1100_v6 }
 0x24e   : > { %v2053_v50 = vpop.eup %2052  ;;  %2062 = vpow2.f32 %v1107_v11  ;;  %v1141_v31 = vpop.permute.xlu1 %1140 }
 0x24f   : > { %1845 = vmatmul.mubr.f32.vlgmr.msra.gmra.mxu0 %v2053_v50  ;;  %1117 = vadd.xlane.f32.xlu1 %v2053_v50  ;;  %2064 = vpow2.f32 %v1075_v29  ;;  %v1158_v42 = vmul.f32 %v1141_v31, %v1134_v25  ;;  %v1112_v50 = vld [vmem:[#allocation3 + $0x18] sm:$0xff] }
 0x250   : > { %1883 = vmatpush3.msra.mxu0 %v739_v48  ;;  %1914 = vmatprep.mubr.msk.f32.mxu0 %vm2189_vm2, %v2188_v20 }
 0x251   : > { %1884 = vmatprep.subr.mxu0 %v2188_v20 }
 0x252   : > { %v2055_v53 = vpop.eup %2054  ;;  %1885 = vmatpush3.msra.mxu0 %v738_v51 }
 0x253   : > { %1886 = vmatprep.subr.mxu0 %v2188_v20  ;;  %1119 = vadd.xlane.f32.xlu0 %v2055_v53  ;;  %v2694_v9 = vpop.eup %2056 }
 0x254   : > { %1887 = vmatpush3.msra.mxu0 %v737_v43  ;;  %1880 = vmatmul.mubr.f32.vlgmr.msra.gmra.mxu1 %v2055_v53  ;;  %v2059_v18 = vpop.eup %2058  ;;  %v1115_v44 = vmul.f32 %v2694_v9, %v1111_v35 }
 0x255   : > { %1918 = vmatpush3.msra.mxu1 %v755_v45  ;;  %1888 = vmatprep.subr.mxu0 %v2188_v20 }
 0x256   : > { %1919 = vmatprep.subr.mxu1 %v2188_v20  ;;  %1889 = vmatpush3.msra.mxu0 %v736_v54 }
 0x257   : > { %1920 = vmatpush3.msra.mxu1 %v754_v55  ;;  %1890 = vmatprep.subr.mxu0 %v2188_v20  ;;  %v2061_v24 = vpop.eup %2060 }
 0x258   : > { %1921 = vmatprep.subr.mxu1 %v2188_v20  ;;  %1891 = vmatpush3.msra.mxu0 %v735_v56 }
 0x259   : > { %1922 = vmatpush3.msra.mxu1 %v753_v58  ;;  %1892 = vmatprep.subr.mxu0 %v2188_v20 }
 0x25a   : > { %1923 = vmatprep.subr.mxu1 %v2188_v20  ;;  %1893 = vmatpush3.msra.mxu0 %v734_v59 }
 0x25b   : > { %1924 = vmatpush3.msra.mxu1 %v752_v60  ;;  %1894 = vmatprep.subr.mxu0 %v2188_v20  ;;  %v2063_v28 = vpop.eup %2062  ;;  %v1136_v60 = vld [vmem:[#allocation4 + $0x10] sm:$0xff] }
 0x25c   : > { %1925 = vmatprep.subr.mxu1 %v2188_v20  ;;  %1895 = vmatpush3.msra.mxu0 %v733_v62  ;;  %v2065_v30 = vpop.eup %2064 }
 0x25d   : > { %1926 = vmatpush3.msra.mxu1 %v751_v0  ;;  %1896 = vmatprep.subr.mxu0 %v2188_v20  ;;  %v1116_v45 = vmul.f32 %v2065_v30, %v1112_v50 }
 0x25e   : > { %1927 = vmatprep.subr.mxu1 %v2188_v20  ;;  %1897 = vmatpush3.msra.mxu0 %v732_v1 }
 0x25f   : > { %1928 = vmatpush3.msra.mxu1 %v750_v3  ;;  %1898 = vmatprep.subr.mxu0 %v2188_v20 }
 0x260   : > { %1929 = vmatprep.subr.mxu1 %v2188_v20  ;;  %1899 = vmatpush3.msra.mxu0 %v731_v47 }
 0x261   : > { %1930 = vmatpush3.msra.mxu1 %v749_v5  ;;  %1900 = vmatprep.subr.mxu0 %v2188_v20 }
 0x262   : > { %1150 = vperm.xlu1 %2049, %v2694_v9   ;;  %1931 = vmatprep.subr.mxu1 %v2188_v20 }
 0x263   : > { %1901 = vmatpush3.msra.mxu0 %v730_v7  ;;  %1932 = vmatpush3.msra.mxu1 %v748_v8 }
 0x264   : > { %1902 = vmatprep.subr.mxu0 %v2188_v20  ;;  %1933 = vmatprep.subr.mxu1 %v2188_v20 }
 0x265   : > { %1903 = vmatpush3.msra.mxu0 %v729_v49  ;;  %1934 = vmatpush3.msra.mxu1 %v747_v10 }
 0x266   : > { %1904 = vmatprep.subr.mxu0 %v2188_v20  ;;  %1935 = vmatprep.subr.mxu1 %v2188_v20 }
 0x267   : > { %1905 = vmatpush3.msra.mxu0 %v728_v12  ;;  %1936 = vmatpush3.msra.mxu1 %v746_v13 }
 0x268   : > { %1906 = vmatprep.subr.mxu0 %v2188_v20  ;;  %1937 = vmatprep.subr.mxu1 %v2188_v20 }
 0x269   : > { %1907 = vmatpush3.msra.mxu0 %v727_v14  ;;  %1938 = vmatpush3.msra.mxu1 %v745_v15 }
 0x26a   : > { %1908 = vmatprep.subr.mxu0 %v2188_v20  ;;  %1939 = vmatprep.subr.mxu1 %v2188_v20 }
 0x26b   : > { %1909 = vmatpush3.msra.mxu0 %v726_v16  ;;  %1145 = vperm.xlu0 %2048, %v2059_v18  }
 0x26c   : > { %1940 = vmatpush3.msra.mxu1 %v744_v17  ;;  %1910 = vmatprep.subr.mxu0 %v2188_v20 }
 0x26d   : > { %1941 = vmatprep.subr.mxu1 %v2188_v20  ;;  %1911 = vmatpush3.msra.mxu0 %v725_v19 }
 0x26e   : > { %1942 = vmatpush3.msra.mxu1 %v743_v21  ;;  %1912 = vmatprep.subr.mxu0 %v2188_v20 }
 0x26f   : > { %1943 = vmatprep.subr.mxu1 %v2188_v20  ;;  %1913 = vmatpush3.msra.mxu0 %v724_v22 }
 0x270   : > { %1944 = vmatpush3.msra.mxu1 %v742_v23  ;;  %1915 = vmatmul.mubr.f32.vlgmr.msra.gmra.mxu0 %v2061_v24 }
 0x271   : > { %1945 = vmatprep.subr.mxu1 %v2188_v20  ;;  %1949 = vmatprep.mubr.msk.f32.mxu1 %vm2189_vm2, %v2188_v20 }
 0x272   : > { %1946 = vmatpush3.msra.mxu1 %v741_v26 }
 0x273   : > { %1947 = vmatprep.subr.mxu1 %v2188_v20  ;;  %v1114_v20 = vmul.f32 %v2059_v18, %v1110_v37 }
 0x274   : > { %1948 = vmatpush3.msra.mxu1 %v740_v27 }
 0x275   : > { %1950 = vmatmul.mubr.f32.vlgmr.msra.gmra.mxu1 %v2063_v28 }
 0x286   : > { %1121 = vadd.xlane.f32.xlu1 %v2061_v24 }
 0x28a   : > { %1123 = vadd.xlane.f32.xlu1 %v2063_v28 }
 0x29b   : > { %1155 = vperm.xlu1 %2049, %v2065_v30  }
 0x2d8   : > { %v1118_v36 = vpop.xlane.xlu1 %1117 }
 0x2d9   : > { %v1125_v39 = vadd.f32 %v1118_v36, %v1113_v34 }
 0x2db   : > { %1130 = vst.msk [vmem:[#allocation3] sm:$0xff] %vm1129_vm4, %v1125_v39 }
 0x2dc   : > { %v1120_v40 = vpop.xlane.xlu0 %1119 }
 0x2dd   : > { %v1126_v41 = vadd.f32 %v1120_v40, %v1114_v20  ;;  %v1151_v32 = vpop.permute.xlu1 %1150 }
 0x2de   : > { %v1160_v61 = vmul.f32 %v1151_v32, %v1136_v60 }
 0x2df   : > { %1131 = vst.msk [vmem:[#allocation3 + $0x8] sm:$0xff] %vm1129_vm4, %v1126_v41 }
 0x2e6   : > { %v1146_v51 = vpop.permute.xlu0 %1145 }
 0x2e7   : > { %v1159_v54 = vmul.f32 %v1146_v51, %v1135_v38 }
 0x30f   : > { %v1122_v46 = vpop.xlane.xlu1 %1121  ;;  %v1228_v48 = vpop.f32.mrf.mxu0 }
 0x310   : > { %v1127_v52 = vadd.f32 %v1122_v46, %v1115_v44  ;;  %v1442_v43 = vadd.f32 %v1228_v48, %v1158_v42 }
 0x311   : > { %v1846_v53 = vpop.f32.mrf.mxu0 }
 0x312   : > { %1132 = vst.msk [vmem:[#allocation3 + $0x10] sm:$0xff] %vm1129_vm4, %v1127_v52 }
 0x313   : > { %1446 = vst.msk [vmem:[#allocation4] sm:$0xff] %vm756_vm3, %v1442_v43  ;;  %v1124_v55 = vpop.xlane.xlu1 %1123 }
 0x314   : > { %v1128_v56 = vadd.f32 %v1124_v55, %v1116_v45  ;;  %v1298_v57 = vpop.f32.mrf.mxu1 }
 0x315   : > { %v1443_v58 = vadd.f32 %v1298_v57, %v1159_v54 }
 0x316   : > { %1133 = vst.msk [vmem:[#allocation3 + $0x18] sm:$0xff] %vm1129_vm4, %v1128_v56  ;;  %v1881_v59 = vpop.f32.mrf.mxu1 }
 0x317   : > { %1447 = vst.msk [vmem:[#allocation4 + $0x8] sm:$0xff] %vm756_vm3, %v1443_v58  ;;  %v1156_v0 = vpop.permute.xlu1 %1155 }
 0x318   : > { %v1161_v3 = vmul.f32 %v1156_v0, %v1137_v63 }
 0x330   : > { %v1368_v62 = vpop.f32.mrf.mxu0 }
 0x331   : > { %v1444_v1 = vadd.f32 %v1368_v62, %v1160_v61 }
 0x332   : > { %v1916_v2 = vpop.f32.mrf.mxu0 }
 0x333   : > { %1448 = vst.msk [vmem:[#allocation4 + $0x10] sm:$0xff] %vm756_vm3, %v1444_v1 }
 0x334   : > { %1457 = sbr.rel (%p1674_p5) target bundleno = 1088 (0x440), region = 116 }
 0x335   : > { %v1438_v47 = vpop.f32.mrf.mxu1 }
 0x336   : > { %v1445_v4 = vadd.f32 %v1438_v47, %v1161_v3 }
 0x337   : > { %v1951_v5 = vpop.f32.mrf.mxu1 }
 0x338   : > { %1449 = vst.msk [vmem:[#allocation4 + $0x18] sm:$0xff] %vm756_vm3, %v1445_v4 }
 0x339   : > { %v1459_v6 = vld [vmem:[#allocation3 + $0x8] sm:$0xff]  ;;  %v1461_v7 = vld [vmem:[#allocation3 + $0x18] sm:$0xff]  ;;  %v1460_v8 = vld [vmem:[#allocation3 + $0x10] sm:$0xff]  ;;  %v2191_v9 = vmov 0   ;;  %vm1507_vm5 = vcmask 523264   ;;  %vm1509_vm6 = vcmask 785408  }
 0x33a   : > { %2066 = vset.pattern.permute.xlu0 %v2191_v9  ;;  %2067 = vset.pattern.permute.xlu1 %v2191_v9  ;;  %2068 = vrcp.f32 %v1459_v6  ;;  %v1458_v49 = vld [vmem:[#allocation3] sm:$0xff]  ;;  %v1467_v14 = vld [vmem:[#allocation4 + $0x8] sm:$0xff]  ;;  %v1468_v19 = vld [vmem:[#allocation4 + $0x10] sm:$0xff] }
 0x33b   : > { %2070 = vrcp.f32 %v1461_v7  ;;  %v1466_v24 = vld [vmem:[#allocation4] sm:$0xff] }
 0x33c   : > { %2072 = vrcp.f32 %v1460_v8 }
 0x33d   : > { %2074 = vrcp.f32 %v1458_v49 }
 0x33f   : > { %v1469_v16 = vld [vmem:[#allocation4 + $0x18] sm:$0xff] }
 0x347   : > { %v2069_v10 = vpop.eup %2068 }
 0x348   : > { %v2071_v11 = vpop.eup %2070  ;;  %1477 = vperm.xlu0 %2066, %v2069_v10  }
 0x349   : > { %v2073_v12 = vpop.eup %2072  ;;  %1487 = vperm.xlu1 %2067, %v2071_v11  }
 0x34a   : > { %v2075_v13 = vpop.eup %2074 }
 0x34c   : > { %1482 = vperm.xlu0 %2066, %v2073_v12  }
 0x34d   : > { %1472 = vperm.xlu1 %2067, %v2075_v13  }
 0x3c3   : > { %v1478_v15 = vpop.permute.xlu0 %1477 }
 0x3c4   : > { %v1491_v17 = vmul.f32 %v1478_v15, %v1467_v14  ;;  %v1488_v18 = vpop.permute.xlu1 %1487 }
 0x3c5   : > { %v1493_v21 = vmul.f32 %v1488_v18, %v1469_v16 }
 0x3c6   : > { %1495 = vrot.lane.b32.xlu0 %v1491_v17, %s2192_s17 }
 0x3c7   : > { %v1483_v22 = vpop.permute.xlu0 %1482 }
 0x3c8   : > { %v1492_v23 = vmul.f32 %v1483_v22, %v1468_v19  ;;  %v1473_v26 = vpop.permute.xlu1 %1472 }
 0x3c9   : > { %v1490_v28 = vmul.f32 %v1473_v26, %v1466_v24 }
 0x3ca   : > { %1499 = vrot.lane.b32.xlu1 %v1492_v23, %s2193_s29  ;;  %1503 = vrot.lane.b32.xlu0 %v1493_v21, %s2194_s5 }
 0x438   : > { %v1496_v27 = vpop.permute.xlu0 %1495 }
 0x439   : > { %v1506_v29 = vsel %vm756_vm3, %v1490_v28, %v1496_v27 }
 0x43c   : > { %v1500_v30 = vpop.permute.xlu1 %1499  ;;  %v1504_v31 = vpop.permute.xlu0 %1503 }
 0x43d   : > { %v1508_v33 = vsel %vm1507_vm5, %v1506_v29, %v1500_v30 }
 0x43e   : > { %v1510_v34 = vsel %vm1509_vm6, %v1508_v33, %v1504_v31 }
 0x43f   : > { %1511 = vst [vmem:[%s636_s15] sm:$0xff] %v1510_v34 }
 0x440 PF: > { %s1676_s9 = sshll.u32 %s2172_s18, 7  ;;  %s1527_s23 = sshll.u32 %s636_s15, 4  ;;  %s1528_s23 = int_to_ptr.vmem [resolvable:$true] %s1527_s23 }
 0x441   : > { %s1525_s22 = scalar_lea.hbm %s2803_s3, %s1676_s9  ;;  %s1513_s27 = scalar_lea.sflag [#allocation8], %s634_s26 }
 0x442   : > { %s2076_s4 = scalar_lea.vmem %s1528_s23, 128  ;;  %s2195_s28 = smov [#allocation7]  }
 0x443   : > { %p2077_p6 = scmp.ne.s32.totalorder %s1528_s23, %s2076_s4  ;;  %s2080_s17 = sshll.u32 %s2195_s28, 4  ;;  %s2081_s17 = int_to_ptr.vmem [resolvable:$false] %s2080_s17 }
 0x444   : > { %s2082_s29 = scalar_lea.vmem %s2081_s17, 256  ;;  %p2083_p10 = scmp.lt.s32.totalorder %s1528_s23, %s2081_s17 }
 0x445   : > { %p2078_p8 = pnand %p2077_p6, %p2288_p7  ;;  %p2084_p11 = scmp.lt.s32.totalorder %s2082_s29, %s2076_s4 }
 0x447   : > { %p2079_p9 = pneg %p2078_p8  ;;  %p2085_p13 = por %p2084_p11, %p2083_p10 }
 0x449   : > { %p2086_p0 = pnand %p2085_p13, %p2079_p9 }
 0x44b   : > { %2089 = shalt.err (!%p2086_p0)
}
 0x44c   : > { %s2090_s18 = scalar_lea.hbm %s1525_s22, 128  ;;  %s2094_s15 = scalar_lea.hbm %s2803_s3, 256 }
 0x44d   : > { %p2091_p1 = scmp.ne.s32.totalorder %s1525_s22, %s2090_s18  ;;  %p2095_p4 = scmp.lt.s32.totalorder %s1525_s22, %s2803_s3 }
 0x44e   : > { %p2096_p5 = scmp.lt.s32.totalorder %s2094_s15, %s2090_s18 }
 0x44f   : > { %p2092_p2 = pnand %p2091_p1, %p2288_p7 }
 0x450   : > { %p2097_p6 = por %p2096_p5, %p2095_p4 }
 0x451   : > { %p2093_p3 = pneg %p2092_p2 }
 0x453   : > { %p2098_p8 = pnand %p2097_p6, %p2093_p3 }
 0x455   : > { %2101 = shalt.err (!%p2098_p8)
}
 0x456   : > { %1952 = dma.vmem_to_hbm [thread:$0]  (%p2288_p7), %s1528_s23, 128, %s1525_s22, %s1513_s27  }
 0x457 PF: > { %p1958_p9 = scmp.ge.s32.totalorder %s2184_s21, 2  ;;  %s1539_s10 = sand.u32 1, %s2148_s12  }
 0x458   : > { %s1540_s11 = scalar_lea.sflag [#allocation8], %s1539_s10 }
 0x459   : > { %p1955_p10 = pnand %p1958_p9, %p2296_p12 }
 0x45b   : > { %p1956_p11 = pneg %p1955_p10 }
 0x45d   : > { %2143 = dma.done.wait (%p1956_p11), %s1540_s11, 128  }
 0x45e   : > { %2145 = vsyncadd (%p1956_p11), %s1540_s11, 4294967168  ;;  %s16_s21 = sadd.s32 1, %s2184_s21   ;;  %s2809_s12 = smov %s2152_s13 }
 0x45f   : > { %p13_p13 = scmp.ge.s32.totalorder %s16_s21, 6   ;;  %s2810_s13 = smov %s2156_s14 }
 0x460   : > { %s2811_s14 = smov %s2301_s7  ;;  %s2812_s15 = smov %s2164_s16 }
 0x461   : > { %s2813_s16 = smov %s2304_s8  ;;  %s2814_s17 = smov %s2176_s19 }
 0x462   : > { %s2815_s18 = smov %s2180_s20  ;;  %s2816_s19 = smov %s2819_s24 }
 0x463   : > { %s2817_s20 = smov %s2823_s25  ;;  %15 = sbr.rel (!%p13_p13) target bundleno = 8 (0x8), region = 167 }
 0x468   :  { %1545 = vsyncpa [#allocation8], 1 }
 0x469   :  { %1547 = vsyncpa [#allocation8 + $0x1], 1 }

</bundles_post_ra>
